<compile_context>
chip_gen: v7x
topology: tpu7x:2x2x1
jax: 0.10.0
libtpu: 0.0.40
codegen_flags: <defaults>
</compile_context>

<pallas_src>
import functools

import jax
import jax.numpy as jnp
from jax.experimental import pallas as pl
from jax.experimental.pallas import tpu as pltpu


# ----------------------------------------------------------------------------
# Fused Pallas kernel: full FuelModel forward
# ----------------------------------------------------------------------------
def _fused_fuel_kernel(*refs, num_layers, T, S, H, w_layout, fuse_head):
    """Fused bidirectional LSTM stack + linear head (single gridless call).

    Gate lane layout (width 8H), direction-interleaved per gate:
        [ i_f | i_b | f_f | f_b | g_f | g_b | o_f | o_b ]      (H lanes each)
    State is the lane-concat [h_f | h_b] / [c_f | c_b] (2H lanes), so each time
    step needs ONE (S,2H)@(2H,8H) matmul for both directions.

    Refs (fuse_head=True):
      x2d    (T*S, Din_pad) f32   time-major flattened (zero-padded) input
      w_slab (R, 8H)        bf16  packed pre-transposed / gate-permuted weights
      b_slab (2L, 8H)       f32   per-(layer,dir) gate bias (b_ih+b_hh), embedded
      whead  (T, 2H)        f32   linear head weight, one row per scan step
      bhead  (1, 1)         f32
      out    (T, 1)         f32
      ys     (T*S, 2H)      f32   VMEM scratch: per-layer output slab
    """
    if fuse_head:
        x_ref, w_ref, b_ref, whead_ref, bhead_ref, out_ref, ys_ref = refs
    else:
        x_ref, w_ref, b_ref, out_ref, ys_ref = refs

    f32, bf16 = jnp.float32, jnp.bfloat16
    H2, H8 = 2 * H, 8 * H

    # sigmoid(x) = 0.5*tanh(x/2) + 0.5  ->  a single tanh over the full 8H-wide
    # gate tile per step.  g-gate lanes ([4H:6H]) keep scale 1 / shift 0.
    lane = jax.lax.broadcasted_iota(jnp.int32, (1, H8), 1)
    is_g = (lane >= 4 * H) & (lane < 6 * H)
    gate_scale = jnp.broadcast_to(jnp.where(is_g, 1.0, 0.5).astype(f32), (S, H8))
    gate_shift = jnp.broadcast_to(jnp.where(is_g, 0.0, 0.5).astype(f32), (S, H8))

    for l in range(num_layers):
        (ofs_if, nr_if), (ofs_ib, nr_ib), (ofs_hh, nr_hh) = w_layout[l]
        wih_f = w_ref[ofs_if:ofs_if + nr_if, :]           # (Din_l, 8H) bf16
        wih_b = w_ref[ofs_ib:ofs_ib + nr_ib, :]           # (Din_l, 8H) bf16
        whh = w_ref[ofs_hh:ofs_hh + nr_hh, :]             # (2H, 8H) bf16 block-diag
        bias_f = b_ref[2 * l:2 * l + 1, :]                # (1, 8H) fwd lanes only
        bias_b = b_ref[2 * l + 1:2 * l + 2, :]            # (1, 8H) bwd lanes only

        if l == 0:
            lhs = x_ref[...].astype(bf16)                 # (T*S, Din_pad)
        else:
            lhs = ys_ref[...].astype(bf16)                # (T*S, 2H) = [y_f | y_b]

        # Hoisted input->gate projection for BOTH directions (off the serial
        # chain).  Each embedded matrix only populates its own direction's lanes,
        # so the per-step fused pre-activation is a single VPU add.
        xg_f = jnp.dot(lhs, wih_f, preferred_element_type=f32) + bias_f
        xg_b = jnp.dot(lhs, wih_b, preferred_element_type=f32) + bias_b

        # Fused fwd+bwd recurrence (fully unrolled, T static steps).
        h = jnp.zeros((S, H2), f32)
        c = jnp.zeros((S, H2), f32)
        for t in range(T):
            rt = T - 1 - t
            g = xg_f[t * S:(t + 1) * S, :] + xg_b[rt * S:(rt + 1) * S, :]
            if t > 0:  # h == 0 at t == 0: recurrent term is exactly zero, skip it
                g = g + jnp.dot(h.astype(bf16), whh, preferred_element_type=f32)
            act = jnp.tanh(g * gate_scale) * gate_scale + gate_shift
            i_g = act[:, 0 * H2:1 * H2]
            f_g = act[:, 1 * H2:2 * H2]
            g_g = act[:, 2 * H2:3 * H2]
            o_g = act[:, 3 * H2:4 * H2]
            c = i_g * g_g if t == 0 else f_g * c + i_g * g_g
            h = o_g * jnp.tanh(c)
            # Scatter back to true-time rows: fwd half -> time t, bwd half -> rt.
            ys_ref[t * S:(t + 1) * S, 0:H] = h[:, 0:H]
            ys_ref[rt * S:(rt + 1) * S, H:H2] = h[:, H:H2]

    if fuse_head:
        # out[s] = sum_t sum_h2 ys[t*S+s, h2] * whead[t, h2] + b.  Valid because
        # batch == seq_len: torch's reshape(-1, seq_len*2H) row s is exactly
        # concat_t([y_f(t)[s,:], y_b(t)[s,:]]).
        acc = ys_ref[0:S, :] * whead_ref[0:1, :]
        for t in range(1, T):
            acc = acc + ys_ref[t * S:(t + 1) * S, :] * whead_ref[t:t + 1, :]
        out_ref[...] = (jnp.sum(acc, axis=-1, keepdims=True)
                        + bhead_ref[...]).astype(out_ref.dtype)
    else:
        # General (batch != seq_len) path: torch's flatten mixes examples; the
        # head is finished host-side on the lane-dense last-layer slab.
        out_ref[...] = ys_ref[...]


# ----------------------------------------------------------------------------
# One-time weight packing (runs ONCE, outside the forward path)
# ----------------------------------------------------------------------------
def pack_fuel_params(lstm_params, lin_w, lin_b, *, input_features, hidden_size,
                     seq_len):
    """Packs all LSTM weights into one bf16 slab + one f32 bias slab.

    Per layer the slab holds [Wih_fwd_emb, Wih_bwd_emb, Whh_blockdiag], each
    pre-transposed and column-permuted into the kernel's direction-interleaved
    gate layout.  Every block starts on a 16-row boundary (bf16 sublane packing).
    """
    H = hidden_size
    H8 = 8 * H
    ALIGN = 16
    num_layers = len(lstm_params)

    def embed(mat_4h, d):
        """Scatter a gate-ordered (R, 4H) matrix into interleaved (R, 8H) lanes."""
        out = jnp.zeros((mat_4h.shape[0], H8), jnp.float32)
        for g in range(4):                    # PyTorch gate order: i, f, g, o
            out = out.at[:, (2 * g + d) * H:(2 * g + d + 1) * H].set(
                mat_4h[:, g * H:(g + 1) * H])
        return out

    blocks, layout, bias_rows = [], [], []
    off = [0]

    def add_block(mat, rows_used):
        start = off[0]
        pad = (-mat.shape[0]) % ALIGN
        blocks.append(jnp.pad(mat, ((0, pad), (0, 0))))
        off[0] += mat.shape[0] + pad
        return (start, rows_used)

    din_pad = max(8, -(-input_features // 8) * 8)   # pad layer-0 K to >= 8
    for l, layer in enumerate(lstm_params):
        entry = []
        whh_fused = jnp.zeros((2 * H, H8), jnp.float32)
        wih_emb = []
        for d, name in enumerate(("fwd", "bwd")):
            w_ih, w_hh, b_ih, b_hh = layer[name]
            wih_t = jnp.asarray(w_ih, jnp.float32).T           # (Din_l, 4H)
            whh_t = jnp.asarray(w_hh, jnp.float32).T           # (H, 4H)
            wih_emb.append(embed(wih_t, d))
            whh_fused = whh_fused.at[d * H:(d + 1) * H, :].set(embed(whh_t, d))
            bias = (jnp.asarray(b_ih, jnp.float32)
                    + jnp.asarray(b_hh, jnp.float32)).reshape(1, 4 * H)
            bias_rows.append(embed(bias, d))
        rows_in = din_pad if l == 0 else 2 * H
        entry.append(add_block(wih_emb[0], rows_in))
        entry.append(add_block(wih_emb[1], rows_in))
        entry.append(add_block(whh_fused, 2 * H))
        layout.append(tuple(entry))

    return {
        "w_slab": jnp.concatenate(blocks, axis=0).astype(jnp.bfloat16),
        "b_slab": jnp.concatenate(bias_rows, axis=0),            # (2L, 8H) f32
        "whead": jnp.asarray(lin_w, jnp.float32).reshape(seq_len, 2 * H),
        "bhead": jnp.asarray(lin_b, jnp.float32).reshape(1, 1),
        "lin_w": jnp.asarray(lin_w, jnp.float32),
        "lin_b": jnp.asarray(lin_b, jnp.float32),
        "layout": tuple(layout),
        "din_pad": din_pad,
        "num_layers": num_layers,
    }


# ----------------------------------------------------------------------------
# Forward factory (jitted wrapper around the single pallas_call)
# ----------------------------------------------------------------------------
def make_fuel_forward(packed, *, seq_len, input_features, hidden_size, batch_size):
    H = hidden_size
    T, S, Din = batch_size, seq_len, input_features
    din_pad = packed["din_pad"]
    fuse_head = (batch_size == seq_len)

    kernel = functools.partial(
        _fused_fuel_kernel, num_layers=packed["num_layers"], T=T, S=S, H=H,
        w_layout=packed["layout"], fuse_head=fuse_head)

    out_shape = (jax.ShapeDtypeStruct((T, 1), jnp.float32) if fuse_head
                 else jax.ShapeDtypeStruct((T * S, 2 * H), jnp.float32))
    call = pl.pallas_call(
        kernel,
        out_shape=out_shape,
        scratch_shapes=[pltpu.VMEM((T * S, 2 * H), jnp.float32)],
    )

    w_slab, b_slab = packed["w_slab"], packed["b_slab"]
    whead, bhead = packed["whead"], packed["bhead"]
    lin_w, lin_b = packed["lin_w"], packed["lin_b"]

    @jax.jit
    def forward(ret_batch):
        # Mirrors torch: X.reshape(seq_len, batch, feat); the batch_first LSTM
        # then scans the original batch axis (T = batch) with lstm-batch = seq_len.
        X = ret_batch.reshape(S, T, Din)
        x2d = jnp.transpose(X, (1, 0, 2)).reshape(T * S, Din).astype(jnp.float32)
        x2d = jnp.pad(x2d, ((0, 0), (0, din_pad - Din)))
        if fuse_head:
            return call(x2d, w_slab, b_slab, whead, bhead)
        # batch != seq_len: torch's reshape(-1, seq_len*2H) mixes examples; finish
        # the head host-side on the kernel's slab output (not hit in __main__).
        slab = call(x2d, w_slab, b_slab)
        output_lstm = jnp.transpose(slab.reshape(T, S, 2 * H), (1, 0, 2))
        flat = output_lstm.reshape(-1, S * 2 * H)
        return jnp.sum(flat * lin_w, axis=-1, keepdims=True) + lin_b

    return forward


# ----------------------------------------------------------------------------
# Pure-JAX reference (mirrors the kernel's bf16 MXU operands, f32 accumulation)
# ----------------------------------------------------------------------------
def _lstm_layer_ref(x_tbd, w_ih, w_hh, b_ih, b_hh):
    H = w_hh.shape[1]
    B = x_tbd.shape[1]
    wih_t = jnp.asarray(w_ih, jnp.float32).T.astype(jnp.bfloat16)
    whh_t = jnp.asarray(w_hh, jnp.float32).T.astype(jnp.bfloat16)
    b = (b_ih + b_hh).astype(jnp.float32)

    def step(carry, x_t):
        h, c = carry
        gates = (jnp.dot(x_t.astype(jnp.bfloat16), wih_t,
                         preferred_element_type=jnp.float32)
                 + jnp.dot(h.astype(jnp.bfloat16), whh_t,
                           preferred_element_type=jnp.float32)
                 + b)
        i = jax.nn.sigmoid(gates[:, 0 * H:1 * H])
        f = jax.nn.sigmoid(gates[:, 1 * H:2 * H])
        g = jnp.tanh(gates[:, 2 * H:3 * H])
        o = jax.nn.sigmoid(gates[:, 3 * H:4 * H])
        c = f * c + i * g
        h = o * jnp.tanh(c)
        return (h, c), h

    init = (jnp.zeros((B, H), jnp.float32), jnp.zeros((B, H), jnp.float32))
    _, ys = jax.lax.scan(step, init, x_tbd)
    return ys


def fuel_model_ref(ret_batch, lstm_params, lin_w, lin_b, *,
                   seq_len, input_features, hidden_size):
    batch = ret_batch.shape[0]
    X = ret_batch.reshape(seq_len, batch, input_features)
    layer_in = jnp.transpose(X, (1, 0, 2))
    for layer in lstm_params:
        y_f = _lstm_layer_ref(layer_in, *layer["fwd"])
        y_b = _lstm_layer_ref(layer_in[::-1], *layer["bwd"])[::-1]
        layer_in = jnp.concatenate([y_f, y_b], axis=-1)
    output_lstm = jnp.transpose(layer_in, (1, 0, 2))
    flat = output_lstm.reshape(-1, seq_len * 2 * hidden_size)
    return jnp.sum(flat * lin_w, axis=-1, keepdims=True) + lin_b


# ----------------------------------------------------------------------------
# Deterministic parameter init (PyTorch-style uniform(-1/sqrt(H), 1/sqrt(H)))
# ----------------------------------------------------------------------------
def init_params(key, input_features, hidden_size, num_layers, seq_len):
    k = 1.0 / (hidden_size ** 0.5)
    layers = []
    for l in range(num_layers):
        din = input_features if l == 0 else 2 * hidden_size
        layer = {}
        for d in ("fwd", "bwd"):
            key, k1, k2, k3, k4 = jax.random.split(key, 5)
            layer[d] = (
                jax.random.uniform(k1, (4 * hidden_size, din), jnp.float32, -k, k),
                jax.random.uniform(k2, (4 * hidden_size, hidden_size), jnp.float32, -k, k),
                jax.random.uniform(k3, (4 * hidden_size,), jnp.float32, -k, k),
                jax.random.uniform(k4, (4 * hidden_size,), jnp.float32, -k, k),
            )
        layers.append(layer)
    fan_in = 2 * hidden_size * seq_len
    kl = 1.0 / (fan_in ** 0.5)
    key, kw, kb = jax.random.split(key, 3)
    lin_w = jax.random.uniform(kw, (1, fan_in), jnp.float32, -kl, kl)
    lin_b = jax.random.uniform(kb, (1,), jnp.float32, -kl, kl)
    return layers, lin_w, lin_b, key


# ----------------------------------------------------------------------------
if __name__ == "__main__":
    batch = 8
    seq_len = 8
    input_features = 4
    hidden_size = 32
    num_layers = 2

    key = jax.random.PRNGKey(0)
    lstm_params, lin_w, lin_b, key = init_params(
        key, input_features, hidden_size, num_layers, seq_len)

    key, kx = jax.random.split(key)
    ret_batch = jax.random.normal(kx, (batch, seq_len, input_features), jnp.float32)

    # One-time packing (outside the forward path), then the jitted fused forward.
    packed = pack_fuel_params(lstm_params, lin_w, lin_b,
                              input_features=input_features,
                              hidden_size=hidden_size, seq_len=seq_len)
    forward = make_fuel_forward(packed, seq_len=seq_len,
                                input_features=input_features,
                                hidden_size=hidden_size, batch_size=batch)

    out = jax.block_until_ready(forward(ret_batch))
    assert out.shape == (batch, 1), out.shape

    ref = fuel_model_ref(ret_batch, lstm_params, lin_w, lin_b,
                         seq_len=seq_len, input_features=input_features,
                         hidden_size=hidden_size)
    # The reference mirrors the kernel's bf16 MXU operands (f32 accumulation and
    # f32 gate/state math), so the residual error is transcendental-impl +
    # accumulation-order noise plus rare one-ULP bf16 re-rounding flips at layer
    # boundaries: expected ~1e-5..1e-4.  5e-3 keeps margin while still catching
    # any real layout / gate-ordering bug (those produce O(1e-1) errors).
    max_err = float(jnp.max(jnp.abs(out - ref)))
    assert max_err < 5e-3, f"max abs error vs reference = {max_err}"

    print("KERNEL_OK")
</pallas_src>

<mosaic_0001>
module attributes {stable_mosaic.version = 11 : i64} {
  func.func @_fused_fuel_kernel(%arg0: memref<64x8xf32, #tpu.memory_space<vmem>>, %arg1: memref<288x256xbf16, #tpu.memory_space<vmem>>, %arg2: memref<4x256xf32, #tpu.memory_space<vmem>>, %arg3: memref<8x64xf32, #tpu.memory_space<vmem>>, %arg4: memref<1x1xf32, #tpu.memory_space<vmem>>, %arg5: memref<8x1xf32, #tpu.memory_space<vmem>>, %arg6: memref<64x64xf32, #tpu.memory_space<vmem>>) attributes {dimension_semantics = [], scalar_prefetch = 0 : i64, scratch_operands = 1 : i64, tpu.core_type = #tpu.core_type<tc>} {
    %0 = tpu.iota {dimensions = array<i32: 1>} : vector<1x256xi32>
    %c128_i32 = arith.constant 128 : i32
    %1 = vector.broadcast %c128_i32 : i32 to vector<1x256xi32>
    %2 = arith.cmpi sge, %0, %1 : vector<1x256xi32>
    %c192_i32 = arith.constant 192 : i32
    %3 = vector.broadcast %c192_i32 : i32 to vector<1x256xi32>
    %4 = arith.cmpi slt, %0, %3 : vector<1x256xi32>
    %5 = arith.andi %2, %4 : vector<1x256xi1>
    %cst = arith.constant 1.000000e+00 : f32
    %cst_0 = arith.constant 5.000000e-01 : f32
    %6 = vector.broadcast %cst : f32 to vector<1x256xf32>
    %7 = vector.broadcast %cst_0 : f32 to vector<1x256xf32>
    %8 = arith.select %5, %6, %7 : vector<1x256xi1>, vector<1x256xf32>
    %9 = vector.shape_cast %8 : vector<1x256xf32> to vector<1x256xf32>
    %10 = vector.broadcast %9 : vector<1x256xf32> to vector<8x256xf32>
    %cst_1 = arith.constant 0.000000e+00 : f32
    %cst_2 = arith.constant 5.000000e-01 : f32
    %11 = vector.broadcast %cst_1 : f32 to vector<1x256xf32>
    %12 = vector.broadcast %cst_2 : f32 to vector<1x256xf32>
    %13 = arith.select %5, %11, %12 : vector<1x256xi1>, vector<1x256xf32>
    %14 = vector.shape_cast %13 : vector<1x256xf32> to vector<1x256xf32>
    %15 = vector.broadcast %14 : vector<1x256xf32> to vector<8x256xf32>
    %c0 = arith.constant 0 : index
    %c0_3 = arith.constant 0 : index
    %16 = vector.load %arg1[%c0, %c0_3] : memref<288x256xbf16, #tpu.memory_space<vmem>>, vector<8x256xbf16>
    %c16 = arith.constant 16 : index
    %c0_4 = arith.constant 0 : index
    %17 = vector.load %arg1[%c16, %c0_4] : memref<288x256xbf16, #tpu.memory_space<vmem>>, vector<8x256xbf16>
    %c32 = arith.constant 32 : index
    %c0_5 = arith.constant 0 : index
    %18 = vector.load %arg1[%c32, %c0_5] : memref<288x256xbf16, #tpu.memory_space<vmem>>, vector<64x256xbf16>
    %c0_6 = arith.constant 0 : index
    %c0_7 = arith.constant 0 : index
    %19 = vector.load %arg2[%c0_6, %c0_7] : memref<4x256xf32, #tpu.memory_space<vmem>>, vector<1x256xf32>
    %c1 = arith.constant 1 : index
    %c0_8 = arith.constant 0 : index
    %20 = vector.load %arg2[%c1, %c0_8] : memref<4x256xf32, #tpu.memory_space<vmem>>, vector<1x256xf32>
    %c0_9 = arith.constant 0 : index
    %c0_10 = arith.constant 0 : index
    %21 = vector.load %arg0[%c0_9, %c0_10] : memref<64x8xf32, #tpu.memory_space<vmem>>, vector<64x8xf32>
    %22 = arith.truncf %21 : vector<64x8xf32> to vector<64x8xbf16>
    %cst_11 = arith.constant dense<0.000000e+00> : vector<64x256xf32>
    %23 = tpu.matmul %22, %16, %cst_11 {dimension_numbers = #tpu.dot_dimension_numbers<[1], [0], [0], [1], [0, 0, 1, 1], [], []>} : vector<64x8xbf16>, vector<8x256xbf16>, vector<64x256xf32> -> vector<64x256xf32>
    %24 = vector.broadcast %19 : vector<1x256xf32> to vector<64x256xf32>
    %25 = arith.addf %23, %24 : vector<64x256xf32>
    %cst_12 = arith.constant dense<0.000000e+00> : vector<64x256xf32>
    %26 = tpu.matmul %22, %17, %cst_12 {dimension_numbers = #tpu.dot_dimension_numbers<[1], [0], [0], [1], [0, 0, 1, 1], [], []>} : vector<64x8xbf16>, vector<8x256xbf16>, vector<64x256xf32> -> vector<64x256xf32>
    %27 = vector.broadcast %20 : vector<1x256xf32> to vector<64x256xf32>
    %28 = arith.addf %26, %27 : vector<64x256xf32>
    %29 = vector.extract_strided_slice %25 {offsets = [0, 0], sizes = [8, 256], strides = [1, 1]} : vector<64x256xf32> to vector<8x256xf32>
    %30 = vector.extract_strided_slice %28 {offsets = [56, 0], sizes = [8, 256], strides = [1, 1]} : vector<64x256xf32> to vector<8x256xf32>
    %31 = arith.addf %29, %30 : vector<8x256xf32>
    %32 = arith.mulf %31, %10 : vector<8x256xf32>
    %33 = math.tanh %32 : vector<8x256xf32>
    %34 = arith.mulf %33, %10 : vector<8x256xf32>
    %35 = arith.addf %34, %15 : vector<8x256xf32>
    %36 = vector.extract_strided_slice %35 {offsets = [0, 0], sizes = [8, 64], strides = [1, 1]} : vector<8x256xf32> to vector<8x64xf32>
    %37 = vector.extract_strided_slice %35 {offsets = [0, 128], sizes = [8, 64], strides = [1, 1]} : vector<8x256xf32> to vector<8x64xf32>
    %38 = vector.extract_strided_slice %35 {offsets = [0, 192], sizes = [8, 64], strides = [1, 1]} : vector<8x256xf32> to vector<8x64xf32>
    %39 = arith.mulf %36, %37 : vector<8x64xf32>
    %40 = math.tanh %39 : vector<8x64xf32>
    %41 = arith.mulf %38, %40 : vector<8x64xf32>
    %42 = vector.extract_strided_slice %41 {offsets = [0, 0], sizes = [8, 32], strides = [1, 1]} : vector<8x64xf32> to vector<8x32xf32>
    %c0_13 = arith.constant 0 : index
    %c0_14 = arith.constant 0 : index
    %43 = vector.load %arg6[%c0_13, %c0_14] : memref<64x64xf32, #tpu.memory_space<vmem>>, vector<8x32xf32>
    tpu.vector_store %arg6[%c0_13, %c0_14], %42 {strides = array<i32>} : memref<64x64xf32, #tpu.memory_space<vmem>>, vector<8x32xf32>,
    %44 = vector.extract_strided_slice %41 {offsets = [0, 32], sizes = [8, 32], strides = [1, 1]} : vector<8x64xf32> to vector<8x32xf32>
    %c56 = arith.constant 56 : index
    %c32_15 = arith.constant 32 : index
    %45 = vector.load %arg6[%c56, %c32_15] : memref<64x64xf32, #tpu.memory_space<vmem>>, vector<8x32xf32>
    tpu.vector_store %arg6[%c56, %c32_15], %44 {strides = array<i32>} : memref<64x64xf32, #tpu.memory_space<vmem>>, vector<8x32xf32>,
    %46 = vector.extract_strided_slice %25 {offsets = [8, 0], sizes = [8, 256], strides = [1, 1]} : vector<64x256xf32> to vector<8x256xf32>
    %47 = vector.extract_strided_slice %28 {offsets = [48, 0], sizes = [8, 256], strides = [1, 1]} : vector<64x256xf32> to vector<8x256xf32>
    %48 = arith.addf %46, %47 : vector<8x256xf32>
    %49 = arith.truncf %41 : vector<8x64xf32> to vector<8x64xbf16>
    %cst_16 = arith.constant dense<0.000000e+00> : vector<8x256xf32>
    %50 = tpu.matmul %49, %18, %cst_16 {dimension_numbers = #tpu.dot_dimension_numbers<[1], [0], [0], [1], [0, 0, 1, 1], [], []>} : vector<8x64xbf16>, vector<64x256xbf16>, vector<8x256xf32> -> vector<8x256xf32>
    %51 = arith.addf %48, %50 : vector<8x256xf32>
    %52 = arith.mulf %51, %10 : vector<8x256xf32>
    %53 = math.tanh %52 : vector<8x256xf32>
    %54 = arith.mulf %53, %10 : vector<8x256xf32>
    %55 = arith.addf %54, %15 : vector<8x256xf32>
    %56 = vector.extract_strided_slice %55 {offsets = [0, 0], sizes = [8, 64], strides = [1, 1]} : vector<8x256xf32> to vector<8x64xf32>
    %57 = vector.extract_strided_slice %55 {offsets = [0, 64], sizes = [8, 64], strides = [1, 1]} : vector<8x256xf32> to vector<8x64xf32>
    %58 = vector.extract_strided_slice %55 {offsets = [0, 128], sizes = [8, 64], strides = [1, 1]} : vector<8x256xf32> to vector<8x64xf32>
    %59 = vector.extract_strided_slice %55 {offsets = [0, 192], sizes = [8, 64], strides = [1, 1]} : vector<8x256xf32> to vector<8x64xf32>
    %60 = arith.mulf %57, %39 : vector<8x64xf32>
    %61 = arith.mulf %56, %58 : vector<8x64xf32>
    %62 = arith.addf %60, %61 : vector<8x64xf32>
    %63 = math.tanh %62 : vector<8x64xf32>
    %64 = arith.mulf %59, %63 : vector<8x64xf32>
    %65 = vector.extract_strided_slice %64 {offsets = [0, 0], sizes = [8, 32], strides = [1, 1]} : vector<8x64xf32> to vector<8x32xf32>
    %c8 = arith.constant 8 : index
    %c0_17 = arith.constant 0 : index
    %66 = vector.load %arg6[%c8, %c0_17] : memref<64x64xf32, #tpu.memory_space<vmem>>, vector<8x32xf32>
    tpu.vector_store %arg6[%c8, %c0_17], %65 {strides = array<i32>} : memref<64x64xf32, #tpu.memory_space<vmem>>, vector<8x32xf32>,
    %67 = vector.extract_strided_slice %64 {offsets = [0, 32], sizes = [8, 32], strides = [1, 1]} : vector<8x64xf32> to vector<8x32xf32>
    %c48 = arith.constant 48 : index
    %c32_18 = arith.constant 32 : index
    %68 = vector.load %arg6[%c48, %c32_18] : memref<64x64xf32, #tpu.memory_space<vmem>>, vector<8x32xf32>
    tpu.vector_store %arg6[%c48, %c32_18], %67 {strides = array<i32>} : memref<64x64xf32, #tpu.memory_space<vmem>>, vector<8x32xf32>,
    %69 = vector.extract_strided_slice %25 {offsets = [16, 0], sizes = [8, 256], strides = [1, 1]} : vector<64x256xf32> to vector<8x256xf32>
    %70 = vector.extract_strided_slice %28 {offsets = [40, 0], sizes = [8, 256], strides = [1, 1]} : vector<64x256xf32> to vector<8x256xf32>
    %71 = arith.addf %69, %70 : vector<8x256xf32>
    %72 = arith.truncf %64 : vector<8x64xf32> to vector<8x64xbf16>
    %cst_19 = arith.constant dense<0.000000e+00> : vector<8x256xf32>
    %73 = tpu.matmul %72, %18, %cst_19 {dimension_numbers = #tpu.dot_dimension_numbers<[1], [0], [0], [1], [0, 0, 1, 1], [], []>} : vector<8x64xbf16>, vector<64x256xbf16>, vector<8x256xf32> -> vector<8x256xf32>
    %74 = arith.addf %71, %73 : vector<8x256xf32>
    %75 = arith.mulf %74, %10 : vector<8x256xf32>
    %76 = math.tanh %75 : vector<8x256xf32>
    %77 = arith.mulf %76, %10 : vector<8x256xf32>
    %78 = arith.addf %77, %15 : vector<8x256xf32>
    %79 = vector.extract_strided_slice %78 {offsets = [0, 0], sizes = [8, 64], strides = [1, 1]} : vector<8x256xf32> to vector<8x64xf32>
    %80 = vector.extract_strided_slice %78 {offsets = [0, 64], sizes = [8, 64], strides = [1, 1]} : vector<8x256xf32> to vector<8x64xf32>
    %81 = vector.extract_strided_slice %78 {offsets = [0, 128], sizes = [8, 64], strides = [1, 1]} : vector<8x256xf32> to vector<8x64xf32>
    %82 = vector.extract_strided_slice %78 {offsets = [0, 192], sizes = [8, 64], strides = [1, 1]} : vector<8x256xf32> to vector<8x64xf32>
    %83 = arith.mulf %80, %62 : vector<8x64xf32>
    %84 = arith.mulf %79, %81 : vector<8x64xf32>
    %85 = arith.addf %83, %84 : vector<8x64xf32>
    %86 = math.tanh %85 : vector<8x64xf32>
    %87 = arith.mulf %82, %86 : vector<8x64xf32>
    %88 = vector.extract_strided_slice %87 {offsets = [0, 0], sizes = [8, 32], strides = [1, 1]} : vector<8x64xf32> to vector<8x32xf32>
    %c16_20 = arith.constant 16 : index
    %c0_21 = arith.constant 0 : index
    %89 = vector.load %arg6[%c16_20, %c0_21] : memref<64x64xf32, #tpu.memory_space<vmem>>, vector<8x32xf32>
    tpu.vector_store %arg6[%c16_20, %c0_21], %88 {strides = array<i32>} : memref<64x64xf32, #tpu.memory_space<vmem>>, vector<8x32xf32>,
    %90 = vector.extract_strided_slice %87 {offsets = [0, 32], sizes = [8, 32], strides = [1, 1]} : vector<8x64xf32> to vector<8x32xf32>
    %c40 = arith.constant 40 : index
    %c32_22 = arith.constant 32 : index
    %91 = vector.load %arg6[%c40, %c32_22] : memref<64x64xf32, #tpu.memory_space<vmem>>, vector<8x32xf32>
    tpu.vector_store %arg6[%c40, %c32_22], %90 {strides = array<i32>} : memref<64x64xf32, #tpu.memory_space<vmem>>, vector<8x32xf32>,
    %92 = vector.extract_strided_slice %25 {offsets = [24, 0], sizes = [8, 256], strides = [1, 1]} : vector<64x256xf32> to vector<8x256xf32>
    %93 = vector.extract_strided_slice %28 {offsets = [32, 0], sizes = [8, 256], strides = [1, 1]} : vector<64x256xf32> to vector<8x256xf32>
    %94 = arith.addf %92, %93 : vector<8x256xf32>
    %95 = arith.truncf %87 : vector<8x64xf32> to vector<8x64xbf16>
    %cst_23 = arith.constant dense<0.000000e+00> : vector<8x256xf32>
    %96 = tpu.matmul %95, %18, %cst_23 {dimension_numbers = #tpu.dot_dimension_numbers<[1], [0], [0], [1], [0, 0, 1, 1], [], []>} : vector<8x64xbf16>, vector<64x256xbf16>, vector<8x256xf32> -> vector<8x256xf32>
    %97 = arith.addf %94, %96 : vector<8x256xf32>
    %98 = arith.mulf %97, %10 : vector<8x256xf32>
    %99 = math.tanh %98 : vector<8x256xf32>
    %100 = arith.mulf %99, %10 : vector<8x256xf32>
    %101 = arith.addf %100, %15 : vector<8x256xf32>
    %102 = vector.extract_strided_slice %101 {offsets = [0, 0], sizes = [8, 64], strides = [1, 1]} : vector<8x256xf32> to vector<8x64xf32>
    %103 = vector.extract_strided_slice %101 {offsets = [0, 64], sizes = [8, 64], strides = [1, 1]} : vector<8x256xf32> to vector<8x64xf32>
    %104 = vector.extract_strided_slice %101 {offsets = [0, 128], sizes = [8, 64], strides = [1, 1]} : vector<8x256xf32> to vector<8x64xf32>
    %105 = vector.extract_strided_slice %101 {offsets = [0, 192], sizes = [8, 64], strides = [1, 1]} : vector<8x256xf32> to vector<8x64xf32>
    %106 = arith.mulf %103, %85 : vector<8x64xf32>
    %107 = arith.mulf %102, %104 : vector<8x64xf32>
    %108 = arith.addf %106, %107 : vector<8x64xf32>
    %109 = math.tanh %108 : vector<8x64xf32>
    %110 = arith.mulf %105, %109 : vector<8x64xf32>
    %111 = vector.extract_strided_slice %110 {offsets = [0, 0], sizes = [8, 32], strides = [1, 1]} : vector<8x64xf32> to vector<8x32xf32>
    %c24 = arith.constant 24 : index
    %c0_24 = arith.constant 0 : index
    %112 = vector.load %arg6[%c24, %c0_24] : memref<64x64xf32, #tpu.memory_space<vmem>>, vector<8x32xf32>
    tpu.vector_store %arg6[%c24, %c0_24], %111 {strides = array<i32>} : memref<64x64xf32, #tpu.memory_space<vmem>>, vector<8x32xf32>,
    %113 = vector.extract_strided_slice %110 {offsets = [0, 32], sizes = [8, 32], strides = [1, 1]} : vector<8x64xf32> to vector<8x32xf32>
    %c32_25 = arith.constant 32 : index
    %c32_26 = arith.constant 32 : index
    %114 = vector.load %arg6[%c32_25, %c32_26] : memref<64x64xf32, #tpu.memory_space<vmem>>, vector<8x32xf32>
    tpu.vector_store %arg6[%c32_25, %c32_26], %113 {strides = array<i32>} : memref<64x64xf32, #tpu.memory_space<vmem>>, vector<8x32xf32>,
    %115 = vector.extract_strided_slice %25 {offsets = [32, 0], sizes = [8, 256], strides = [1, 1]} : vector<64x256xf32> to vector<8x256xf32>
    %116 = vector.extract_strided_slice %28 {offsets = [24, 0], sizes = [8, 256], strides = [1, 1]} : vector<64x256xf32> to vector<8x256xf32>
    %117 = arith.addf %115, %116 : vector<8x256xf32>
    %118 = arith.truncf %110 : vector<8x64xf32> to vector<8x64xbf16>
    %cst_27 = arith.constant dense<0.000000e+00> : vector<8x256xf32>
    %119 = tpu.matmul %118, %18, %cst_27 {dimension_numbers = #tpu.dot_dimension_numbers<[1], [0], [0], [1], [0, 0, 1, 1], [], []>} : vector<8x64xbf16>, vector<64x256xbf16>, vector<8x256xf32> -> vector<8x256xf32>
    %120 = arith.addf %117, %119 : vector<8x256xf32>
    %121 = arith.mulf %120, %10 : vector<8x256xf32>
    %122 = math.tanh %121 : vector<8x256xf32>
    %123 = arith.mulf %122, %10 : vector<8x256xf32>
    %124 = arith.addf %123, %15 : vector<8x256xf32>
    %125 = vector.extract_strided_slice %124 {offsets = [0, 0], sizes = [8, 64], strides = [1, 1]} : vector<8x256xf32> to vector<8x64xf32>
    %126 = vector.extract_strided_slice %124 {offsets = [0, 64], sizes = [8, 64], strides = [1, 1]} : vector<8x256xf32> to vector<8x64xf32>
    %127 = vector.extract_strided_slice %124 {offsets = [0, 128], sizes = [8, 64], strides = [1, 1]} : vector<8x256xf32> to vector<8x64xf32>
    %128 = vector.extract_strided_slice %124 {offsets = [0, 192], sizes = [8, 64], strides = [1, 1]} : vector<8x256xf32> to vector<8x64xf32>
    %129 = arith.mulf %126, %108 : vector<8x64xf32>
    %130 = arith.mulf %125, %127 : vector<8x64xf32>
    %131 = arith.addf %129, %130 : vector<8x64xf32>
    %132 = math.tanh %131 : vector<8x64xf32>
    %133 = arith.mulf %128, %132 : vector<8x64xf32>
    %134 = vector.extract_strided_slice %133 {offsets = [0, 0], sizes = [8, 32], strides = [1, 1]} : vector<8x64xf32> to vector<8x32xf32>
    %c32_28 = arith.constant 32 : index
    %c0_29 = arith.constant 0 : index
    %135 = vector.load %arg6[%c32_28, %c0_29] : memref<64x64xf32, #tpu.memory_space<vmem>>, vector<8x32xf32>
    tpu.vector_store %arg6[%c32_28, %c0_29], %134 {strides = array<i32>} : memref<64x64xf32, #tpu.memory_space<vmem>>, vector<8x32xf32>,
    %136 = vector.extract_strided_slice %133 {offsets = [0, 32], sizes = [8, 32], strides = [1, 1]} : vector<8x64xf32> to vector<8x32xf32>
    %c24_30 = arith.constant 24 : index
    %c32_31 = arith.constant 32 : index
    %137 = vector.load %arg6[%c24_30, %c32_31] : memref<64x64xf32, #tpu.memory_space<vmem>>, vector<8x32xf32>
    tpu.vector_store %arg6[%c24_30, %c32_31], %136 {strides = array<i32>} : memref<64x64xf32, #tpu.memory_space<vmem>>, vector<8x32xf32>,
    %138 = vector.extract_strided_slice %25 {offsets = [40, 0], sizes = [8, 256], strides = [1, 1]} : vector<64x256xf32> to vector<8x256xf32>
    %139 = vector.extract_strided_slice %28 {offsets = [16, 0], sizes = [8, 256], strides = [1, 1]} : vector<64x256xf32> to vector<8x256xf32>
    %140 = arith.addf %138, %139 : vector<8x256xf32>
    %141 = arith.truncf %133 : vector<8x64xf32> to vector<8x64xbf16>
    %cst_32 = arith.constant dense<0.000000e+00> : vector<8x256xf32>
    %142 = tpu.matmul %141, %18, %cst_32 {dimension_numbers = #tpu.dot_dimension_numbers<[1], [0], [0], [1], [0, 0, 1, 1], [], []>} : vector<8x64xbf16>, vector<64x256xbf16>, vector<8x256xf32> -> vector<8x256xf32>
    %143 = arith.addf %140, %142 : vector<8x256xf32>
    %144 = arith.mulf %143, %10 : vector<8x256xf32>
    %145 = math.tanh %144 : vector<8x256xf32>
    %146 = arith.mulf %145, %10 : vector<8x256xf32>
    %147 = arith.addf %146, %15 : vector<8x256xf32>
    %148 = vector.extract_strided_slice %147 {offsets = [0, 0], sizes = [8, 64], strides = [1, 1]} : vector<8x256xf32> to vector<8x64xf32>
    %149 = vector.extract_strided_slice %147 {offsets = [0, 64], sizes = [8, 64], strides = [1, 1]} : vector<8x256xf32> to vector<8x64xf32>
    %150 = vector.extract_strided_slice %147 {offsets = [0, 128], sizes = [8, 64], strides = [1, 1]} : vector<8x256xf32> to vector<8x64xf32>
    %151 = vector.extract_strided_slice %147 {offsets = [0, 192], sizes = [8, 64], strides = [1, 1]} : vector<8x256xf32> to vector<8x64xf32>
    %152 = arith.mulf %149, %131 : vector<8x64xf32>
    %153 = arith.mulf %148, %150 : vector<8x64xf32>
    %154 = arith.addf %152, %153 : vector<8x64xf32>
    %155 = math.tanh %154 : vector<8x64xf32>
    %156 = arith.mulf %151, %155 : vector<8x64xf32>
    %157 = vector.extract_strided_slice %156 {offsets = [0, 0], sizes = [8, 32], strides = [1, 1]} : vector<8x64xf32> to vector<8x32xf32>
    %c40_33 = arith.constant 40 : index
    %c0_34 = arith.constant 0 : index
    %158 = vector.load %arg6[%c40_33, %c0_34] : memref<64x64xf32, #tpu.memory_space<vmem>>, vector<8x32xf32>
    tpu.vector_store %arg6[%c40_33, %c0_34], %157 {strides = array<i32>} : memref<64x64xf32, #tpu.memory_space<vmem>>, vector<8x32xf32>,
    %159 = vector.extract_strided_slice %156 {offsets = [0, 32], sizes = [8, 32], strides = [1, 1]} : vector<8x64xf32> to vector<8x32xf32>
    %c16_35 = arith.constant 16 : index
    %c32_36 = arith.constant 32 : index
    %160 = vector.load %arg6[%c16_35, %c32_36] : memref<64x64xf32, #tpu.memory_space<vmem>>, vector<8x32xf32>
    tpu.vector_store %arg6[%c16_35, %c32_36], %159 {strides = array<i32>} : memref<64x64xf32, #tpu.memory_space<vmem>>, vector<8x32xf32>,
    %161 = vector.extract_strided_slice %25 {offsets = [48, 0], sizes = [8, 256], strides = [1, 1]} : vector<64x256xf32> to vector<8x256xf32>
    %162 = vector.extract_strided_slice %28 {offsets = [8, 0], sizes = [8, 256], strides = [1, 1]} : vector<64x256xf32> to vector<8x256xf32>
    %163 = arith.addf %161, %162 : vector<8x256xf32>
    %164 = arith.truncf %156 : vector<8x64xf32> to vector<8x64xbf16>
    %cst_37 = arith.constant dense<0.000000e+00> : vector<8x256xf32>
    %165 = tpu.matmul %164, %18, %cst_37 {dimension_numbers = #tpu.dot_dimension_numbers<[1], [0], [0], [1], [0, 0, 1, 1], [], []>} : vector<8x64xbf16>, vector<64x256xbf16>, vector<8x256xf32> -> vector<8x256xf32>
    %166 = arith.addf %163, %165 : vector<8x256xf32>
    %167 = arith.mulf %166, %10 : vector<8x256xf32>
    %168 = math.tanh %167 : vector<8x256xf32>
    %169 = arith.mulf %168, %10 : vector<8x256xf32>
    %170 = arith.addf %169, %15 : vector<8x256xf32>
    %171 = vector.extract_strided_slice %170 {offsets = [0, 0], sizes = [8, 64], strides = [1, 1]} : vector<8x256xf32> to vector<8x64xf32>
    %172 = vector.extract_strided_slice %170 {offsets = [0, 64], sizes = [8, 64], strides = [1, 1]} : vector<8x256xf32> to vector<8x64xf32>
    %173 = vector.extract_strided_slice %170 {offsets = [0, 128], sizes = [8, 64], strides = [1, 1]} : vector<8x256xf32> to vector<8x64xf32>
    %174 = vector.extract_strided_slice %170 {offsets = [0, 192], sizes = [8, 64], strides = [1, 1]} : vector<8x256xf32> to vector<8x64xf32>
    %175 = arith.mulf %172, %154 : vector<8x64xf32>
    %176 = arith.mulf %171, %173 : vector<8x64xf32>
    %177 = arith.addf %175, %176 : vector<8x64xf32>
    %178 = math.tanh %177 : vector<8x64xf32>
    %179 = arith.mulf %174, %178 : vector<8x64xf32>
    %180 = vector.extract_strided_slice %179 {offsets = [0, 0], sizes = [8, 32], strides = [1, 1]} : vector<8x64xf32> to vector<8x32xf32>
    %c48_38 = arith.constant 48 : index
    %c0_39 = arith.constant 0 : index
    %181 = vector.load %arg6[%c48_38, %c0_39] : memref<64x64xf32, #tpu.memory_space<vmem>>, vector<8x32xf32>
    tpu.vector_store %arg6[%c48_38, %c0_39], %180 {strides = array<i32>} : memref<64x64xf32, #tpu.memory_space<vmem>>, vector<8x32xf32>,
    %182 = vector.extract_strided_slice %179 {offsets = [0, 32], sizes = [8, 32], strides = [1, 1]} : vector<8x64xf32> to vector<8x32xf32>
    %c8_40 = arith.constant 8 : index
    %c32_41 = arith.constant 32 : index
    %183 = vector.load %arg6[%c8_40, %c32_41] : memref<64x64xf32, #tpu.memory_space<vmem>>, vector<8x32xf32>
    tpu.vector_store %arg6[%c8_40, %c32_41], %182 {strides = array<i32>} : memref<64x64xf32, #tpu.memory_space<vmem>>, vector<8x32xf32>,
    %184 = vector.extract_strided_slice %25 {offsets = [56, 0], sizes = [8, 256], strides = [1, 1]} : vector<64x256xf32> to vector<8x256xf32>
    %185 = vector.extract_strided_slice %28 {offsets = [0, 0], sizes = [8, 256], strides = [1, 1]} : vector<64x256xf32> to vector<8x256xf32>
    %186 = arith.addf %184, %185 : vector<8x256xf32>
    %187 = arith.truncf %179 : vector<8x64xf32> to vector<8x64xbf16>
    %cst_42 = arith.constant dense<0.000000e+00> : vector<8x256xf32>
    %188 = tpu.matmul %187, %18, %cst_42 {dimension_numbers = #tpu.dot_dimension_numbers<[1], [0], [0], [1], [0, 0, 1, 1], [], []>} : vector<8x64xbf16>, vector<64x256xbf16>, vector<8x256xf32> -> vector<8x256xf32>
    %189 = arith.addf %186, %188 : vector<8x256xf32>
    %190 = arith.mulf %189, %10 : vector<8x256xf32>
    %191 = math.tanh %190 : vector<8x256xf32>
    %192 = arith.mulf %191, %10 : vector<8x256xf32>
    %193 = arith.addf %192, %15 : vector<8x256xf32>
    %194 = vector.extract_strided_slice %193 {offsets = [0, 0], sizes = [8, 64], strides = [1, 1]} : vector<8x256xf32> to vector<8x64xf32>
    %195 = vector.extract_strided_slice %193 {offsets = [0, 64], sizes = [8, 64], strides = [1, 1]} : vector<8x256xf32> to vector<8x64xf32>
    %196 = vector.extract_strided_slice %193 {offsets = [0, 128], sizes = [8, 64], strides = [1, 1]} : vector<8x256xf32> to vector<8x64xf32>
    %197 = vector.extract_strided_slice %193 {offsets = [0, 192], sizes = [8, 64], strides = [1, 1]} : vector<8x256xf32> to vector<8x64xf32>
    %198 = arith.mulf %195, %177 : vector<8x64xf32>
    %199 = arith.mulf %194, %196 : vector<8x64xf32>
    %200 = arith.addf %198, %199 : vector<8x64xf32>
    %201 = math.tanh %200 : vector<8x64xf32>
    %202 = arith.mulf %197, %201 : vector<8x64xf32>
    %203 = vector.extract_strided_slice %202 {offsets = [0, 0], sizes = [8, 32], strides = [1, 1]} : vector<8x64xf32> to vector<8x32xf32>
    %c56_43 = arith.constant 56 : index
    %c0_44 = arith.constant 0 : index
    %204 = vector.load %arg6[%c56_43, %c0_44] : memref<64x64xf32, #tpu.memory_space<vmem>>, vector<8x32xf32>
    tpu.vector_store %arg6[%c56_43, %c0_44], %203 {strides = array<i32>} : memref<64x64xf32, #tpu.memory_space<vmem>>, vector<8x32xf32>,
    %205 = vector.extract_strided_slice %202 {offsets = [0, 32], sizes = [8, 32], strides = [1, 1]} : vector<8x64xf32> to vector<8x32xf32>
    %c0_45 = arith.constant 0 : index
    %c32_46 = arith.constant 32 : index
    %206 = vector.load %arg6[%c0_45, %c32_46] : memref<64x64xf32, #tpu.memory_space<vmem>>, vector<8x32xf32>
    tpu.vector_store %arg6[%c0_45, %c32_46], %205 {strides = array<i32>} : memref<64x64xf32, #tpu.memory_space<vmem>>, vector<8x32xf32>,
    %c96 = arith.constant 96 : index
    %c0_47 = arith.constant 0 : index
    %207 = vector.load %arg1[%c96, %c0_47] : memref<288x256xbf16, #tpu.memory_space<vmem>>, vector<64x256xbf16>
    %c160 = arith.constant 160 : index
    %c0_48 = arith.constant 0 : index
    %208 = vector.load %arg1[%c160, %c0_48] : memref<288x256xbf16, #tpu.memory_space<vmem>>, vector<64x256xbf16>
    %c224 = arith.constant 224 : index
    %c0_49 = arith.constant 0 : index
    %209 = vector.load %arg1[%c224, %c0_49] : memref<288x256xbf16, #tpu.memory_space<vmem>>, vector<64x256xbf16>
    %c2 = arith.constant 2 : index
    %c0_50 = arith.constant 0 : index
    %210 = vector.load %arg2[%c2, %c0_50] : memref<4x256xf32, #tpu.memory_space<vmem>>, vector<1x256xf32>
    %c3 = arith.constant 3 : index
    %c0_51 = arith.constant 0 : index
    %211 = vector.load %arg2[%c3, %c0_51] : memref<4x256xf32, #tpu.memory_space<vmem>>, vector<1x256xf32>
    %c0_52 = arith.constant 0 : index
    %c0_53 = arith.constant 0 : index
    %212 = vector.load %arg6[%c0_52, %c0_53] : memref<64x64xf32, #tpu.memory_space<vmem>>, vector<64x64xf32>
    %213 = arith.truncf %212 : vector<64x64xf32> to vector<64x64xbf16>
    %cst_54 = arith.constant dense<0.000000e+00> : vector<64x256xf32>
    %214 = tpu.matmul %213, %207, %cst_54 {dimension_numbers = #tpu.dot_dimension_numbers<[1], [0], [0], [1], [0, 0, 1, 1], [], []>} : vector<64x64xbf16>, vector<64x256xbf16>, vector<64x256xf32> -> vector<64x256xf32>
    %215 = vector.broadcast %210 : vector<1x256xf32> to vector<64x256xf32>
    %216 = arith.addf %214, %215 : vector<64x256xf32>
    %cst_55 = arith.constant dense<0.000000e+00> : vector<64x256xf32>
    %217 = tpu.matmul %213, %208, %cst_55 {dimension_numbers = #tpu.dot_dimension_numbers<[1], [0], [0], [1], [0, 0, 1, 1], [], []>} : vector<64x64xbf16>, vector<64x256xbf16>, vector<64x256xf32> -> vector<64x256xf32>
    %218 = vector.broadcast %211 : vector<1x256xf32> to vector<64x256xf32>
    %219 = arith.addf %217, %218 : vector<64x256xf32>
    %220 = vector.extract_strided_slice %216 {offsets = [0, 0], sizes = [8, 256], strides = [1, 1]} : vector<64x256xf32> to vector<8x256xf32>
    %221 = vector.extract_strided_slice %219 {offsets = [56, 0], sizes = [8, 256], strides = [1, 1]} : vector<64x256xf32> to vector<8x256xf32>
    %222 = arith.addf %220, %221 : vector<8x256xf32>
    %223 = arith.mulf %222, %10 : vector<8x256xf32>
    %224 = math.tanh %223 : vector<8x256xf32>
    %225 = arith.mulf %224, %10 : vector<8x256xf32>
    %226 = arith.addf %225, %15 : vector<8x256xf32>
    %227 = vector.extract_strided_slice %226 {offsets = [0, 0], sizes = [8, 64], strides = [1, 1]} : vector<8x256xf32> to vector<8x64xf32>
    %228 = vector.extract_strided_slice %226 {offsets = [0, 128], sizes = [8, 64], strides = [1, 1]} : vector<8x256xf32> to vector<8x64xf32>
    %229 = vector.extract_strided_slice %226 {offsets = [0, 192], sizes = [8, 64], strides = [1, 1]} : vector<8x256xf32> to vector<8x64xf32>
    %230 = arith.mulf %227, %228 : vector<8x64xf32>
    %231 = math.tanh %230 : vector<8x64xf32>
    %232 = arith.mulf %229, %231 : vector<8x64xf32>
    %233 = vector.extract_strided_slice %232 {offsets = [0, 0], sizes = [8, 32], strides = [1, 1]} : vector<8x64xf32> to vector<8x32xf32>
    %c0_56 = arith.constant 0 : index
    %c0_57 = arith.constant 0 : index
    %234 = vector.load %arg6[%c0_56, %c0_57] : memref<64x64xf32, #tpu.memory_space<vmem>>, vector<8x32xf32>
    tpu.vector_store %arg6[%c0_56, %c0_57], %233 {strides = array<i32>} : memref<64x64xf32, #tpu.memory_space<vmem>>, vector<8x32xf32>,
    %235 = vector.extract_strided_slice %232 {offsets = [0, 32], sizes = [8, 32], strides = [1, 1]} : vector<8x64xf32> to vector<8x32xf32>
    %c56_58 = arith.constant 56 : index
    %c32_59 = arith.constant 32 : index
    %236 = vector.load %arg6[%c56_58, %c32_59] : memref<64x64xf32, #tpu.memory_space<vmem>>, vector<8x32xf32>
    tpu.vector_store %arg6[%c56_58, %c32_59], %235 {strides = array<i32>} : memref<64x64xf32, #tpu.memory_space<vmem>>, vector<8x32xf32>,
    %237 = vector.extract_strided_slice %216 {offsets = [8, 0], sizes = [8, 256], strides = [1, 1]} : vector<64x256xf32> to vector<8x256xf32>
    %238 = vector.extract_strided_slice %219 {offsets = [48, 0], sizes = [8, 256], strides = [1, 1]} : vector<64x256xf32> to vector<8x256xf32>
    %239 = arith.addf %237, %238 : vector<8x256xf32>
    %240 = arith.truncf %232 : vector<8x64xf32> to vector<8x64xbf16>
    %cst_60 = arith.constant dense<0.000000e+00> : vector<8x256xf32>
    %241 = tpu.matmul %240, %209, %cst_60 {dimension_numbers = #tpu.dot_dimension_numbers<[1], [0], [0], [1], [0, 0, 1, 1], [], []>} : vector<8x64xbf16>, vector<64x256xbf16>, vector<8x256xf32> -> vector<8x256xf32>
    %242 = arith.addf %239, %241 : vector<8x256xf32>
    %243 = arith.mulf %242, %10 : vector<8x256xf32>
    %244 = math.tanh %243 : vector<8x256xf32>
    %245 = arith.mulf %244, %10 : vector<8x256xf32>
    %246 = arith.addf %245, %15 : vector<8x256xf32>
    %247 = vector.extract_strided_slice %246 {offsets = [0, 0], sizes = [8, 64], strides = [1, 1]} : vector<8x256xf32> to vector<8x64xf32>
    %248 = vector.extract_strided_slice %246 {offsets = [0, 64], sizes = [8, 64], strides = [1, 1]} : vector<8x256xf32> to vector<8x64xf32>
    %249 = vector.extract_strided_slice %246 {offsets = [0, 128], sizes = [8, 64], strides = [1, 1]} : vector<8x256xf32> to vector<8x64xf32>
    %250 = vector.extract_strided_slice %246 {offsets = [0, 192], sizes = [8, 64], strides = [1, 1]} : vector<8x256xf32> to vector<8x64xf32>
    %251 = arith.mulf %248, %230 : vector<8x64xf32>
    %252 = arith.mulf %247, %249 : vector<8x64xf32>
    %253 = arith.addf %251, %252 : vector<8x64xf32>
    %254 = math.tanh %253 : vector<8x64xf32>
    %255 = arith.mulf %250, %254 : vector<8x64xf32>
    %256 = vector.extract_strided_slice %255 {offsets = [0, 0], sizes = [8, 32], strides = [1, 1]} : vector<8x64xf32> to vector<8x32xf32>
    %c8_61 = arith.constant 8 : index
    %c0_62 = arith.constant 0 : index
    %257 = vector.load %arg6[%c8_61, %c0_62] : memref<64x64xf32, #tpu.memory_space<vmem>>, vector<8x32xf32>
    tpu.vector_store %arg6[%c8_61, %c0_62], %256 {strides = array<i32>} : memref<64x64xf32, #tpu.memory_space<vmem>>, vector<8x32xf32>,
    %258 = vector.extract_strided_slice %255 {offsets = [0, 32], sizes = [8, 32], strides = [1, 1]} : vector<8x64xf32> to vector<8x32xf32>
    %c48_63 = arith.constant 48 : index
    %c32_64 = arith.constant 32 : index
    %259 = vector.load %arg6[%c48_63, %c32_64] : memref<64x64xf32, #tpu.memory_space<vmem>>, vector<8x32xf32>
    tpu.vector_store %arg6[%c48_63, %c32_64], %258 {strides = array<i32>} : memref<64x64xf32, #tpu.memory_space<vmem>>, vector<8x32xf32>,
    %260 = vector.extract_strided_slice %216 {offsets = [16, 0], sizes = [8, 256], strides = [1, 1]} : vector<64x256xf32> to vector<8x256xf32>
    %261 = vector.extract_strided_slice %219 {offsets = [40, 0], sizes = [8, 256], strides = [1, 1]} : vector<64x256xf32> to vector<8x256xf32>
    %262 = arith.addf %260, %261 : vector<8x256xf32>
    %263 = arith.truncf %255 : vector<8x64xf32> to vector<8x64xbf16>
    %cst_65 = arith.constant dense<0.000000e+00> : vector<8x256xf32>
    %264 = tpu.matmul %263, %209, %cst_65 {dimension_numbers = #tpu.dot_dimension_numbers<[1], [0], [0], [1], [0, 0, 1, 1], [], []>} : vector<8x64xbf16>, vector<64x256xbf16>, vector<8x256xf32> -> vector<8x256xf32>
    %265 = arith.addf %262, %264 : vector<8x256xf32>
    %266 = arith.mulf %265, %10 : vector<8x256xf32>
    %267 = math.tanh %266 : vector<8x256xf32>
    %268 = arith.mulf %267, %10 : vector<8x256xf32>
    %269 = arith.addf %268, %15 : vector<8x256xf32>
    %270 = vector.extract_strided_slice %269 {offsets = [0, 0], sizes = [8, 64], strides = [1, 1]} : vector<8x256xf32> to vector<8x64xf32>
    %271 = vector.extract_strided_slice %269 {offsets = [0, 64], sizes = [8, 64], strides = [1, 1]} : vector<8x256xf32> to vector<8x64xf32>
    %272 = vector.extract_strided_slice %269 {offsets = [0, 128], sizes = [8, 64], strides = [1, 1]} : vector<8x256xf32> to vector<8x64xf32>
    %273 = vector.extract_strided_slice %269 {offsets = [0, 192], sizes = [8, 64], strides = [1, 1]} : vector<8x256xf32> to vector<8x64xf32>
    %274 = arith.mulf %271, %253 : vector<8x64xf32>
    %275 = arith.mulf %270, %272 : vector<8x64xf32>
    %276 = arith.addf %274, %275 : vector<8x64xf32>
    %277 = math.tanh %276 : vector<8x64xf32>
    %278 = arith.mulf %273, %277 : vector<8x64xf32>
    %279 = vector.extract_strided_slice %278 {offsets = [0, 0], sizes = [8, 32], strides = [1, 1]} : vector<8x64xf32> to vector<8x32xf32>
    %c16_66 = arith.constant 16 : index
    %c0_67 = arith.constant 0 : index
    %280 = vector.load %arg6[%c16_66, %c0_67] : memref<64x64xf32, #tpu.memory_space<vmem>>, vector<8x32xf32>
    tpu.vector_store %arg6[%c16_66, %c0_67], %279 {strides = array<i32>} : memref<64x64xf32, #tpu.memory_space<vmem>>, vector<8x32xf32>,
    %281 = vector.extract_strided_slice %278 {offsets = [0, 32], sizes = [8, 32], strides = [1, 1]} : vector<8x64xf32> to vector<8x32xf32>
    %c40_68 = arith.constant 40 : index
    %c32_69 = arith.constant 32 : index
    %282 = vector.load %arg6[%c40_68, %c32_69] : memref<64x64xf32, #tpu.memory_space<vmem>>, vector<8x32xf32>
    tpu.vector_store %arg6[%c40_68, %c32_69], %281 {strides = array<i32>} : memref<64x64xf32, #tpu.memory_space<vmem>>, vector<8x32xf32>,
    %283 = vector.extract_strided_slice %216 {offsets = [24, 0], sizes = [8, 256], strides = [1, 1]} : vector<64x256xf32> to vector<8x256xf32>
    %284 = vector.extract_strided_slice %219 {offsets = [32, 0], sizes = [8, 256], strides = [1, 1]} : vector<64x256xf32> to vector<8x256xf32>
    %285 = arith.addf %283, %284 : vector<8x256xf32>
    %286 = arith.truncf %278 : vector<8x64xf32> to vector<8x64xbf16>
    %cst_70 = arith.constant dense<0.000000e+00> : vector<8x256xf32>
    %287 = tpu.matmul %286, %209, %cst_70 {dimension_numbers = #tpu.dot_dimension_numbers<[1], [0], [0], [1], [0, 0, 1, 1], [], []>} : vector<8x64xbf16>, vector<64x256xbf16>, vector<8x256xf32> -> vector<8x256xf32>
    %288 = arith.addf %285, %287 : vector<8x256xf32>
    %289 = arith.mulf %288, %10 : vector<8x256xf32>
    %290 = math.tanh %289 : vector<8x256xf32>
    %291 = arith.mulf %290, %10 : vector<8x256xf32>
    %292 = arith.addf %291, %15 : vector<8x256xf32>
    %293 = vector.extract_strided_slice %292 {offsets = [0, 0], sizes = [8, 64], strides = [1, 1]} : vector<8x256xf32> to vector<8x64xf32>
    %294 = vector.extract_strided_slice %292 {offsets = [0, 64], sizes = [8, 64], strides = [1, 1]} : vector<8x256xf32> to vector<8x64xf32>
    %295 = vector.extract_strided_slice %292 {offsets = [0, 128], sizes = [8, 64], strides = [1, 1]} : vector<8x256xf32> to vector<8x64xf32>
    %296 = vector.extract_strided_slice %292 {offsets = [0, 192], sizes = [8, 64], strides = [1, 1]} : vector<8x256xf32> to vector<8x64xf32>
    %297 = arith.mulf %294, %276 : vector<8x64xf32>
    %298 = arith.mulf %293, %295 : vector<8x64xf32>
    %299 = arith.addf %297, %298 : vector<8x64xf32>
    %300 = math.tanh %299 : vector<8x64xf32>
    %301 = arith.mulf %296, %300 : vector<8x64xf32>
    %302 = vector.extract_strided_slice %301 {offsets = [0, 0], sizes = [8, 32], strides = [1, 1]} : vector<8x64xf32> to vector<8x32xf32>
    %c24_71 = arith.constant 24 : index
    %c0_72 = arith.constant 0 : index
    %303 = vector.load %arg6[%c24_71, %c0_72] : memref<64x64xf32, #tpu.memory_space<vmem>>, vector<8x32xf32>
    tpu.vector_store %arg6[%c24_71, %c0_72], %302 {strides = array<i32>} : memref<64x64xf32, #tpu.memory_space<vmem>>, vector<8x32xf32>,
    %304 = vector.extract_strided_slice %301 {offsets = [0, 32], sizes = [8, 32], strides = [1, 1]} : vector<8x64xf32> to vector<8x32xf32>
    %c32_73 = arith.constant 32 : index
    %c32_74 = arith.constant 32 : index
    %305 = vector.load %arg6[%c32_73, %c32_74] : memref<64x64xf32, #tpu.memory_space<vmem>>, vector<8x32xf32>
    tpu.vector_store %arg6[%c32_73, %c32_74], %304 {strides = array<i32>} : memref<64x64xf32, #tpu.memory_space<vmem>>, vector<8x32xf32>,
    %306 = vector.extract_strided_slice %216 {offsets = [32, 0], sizes = [8, 256], strides = [1, 1]} : vector<64x256xf32> to vector<8x256xf32>
    %307 = vector.extract_strided_slice %219 {offsets = [24, 0], sizes = [8, 256], strides = [1, 1]} : vector<64x256xf32> to vector<8x256xf32>
    %308 = arith.addf %306, %307 : vector<8x256xf32>
    %309 = arith.truncf %301 : vector<8x64xf32> to vector<8x64xbf16>
    %cst_75 = arith.constant dense<0.000000e+00> : vector<8x256xf32>
    %310 = tpu.matmul %309, %209, %cst_75 {dimension_numbers = #tpu.dot_dimension_numbers<[1], [0], [0], [1], [0, 0, 1, 1], [], []>} : vector<8x64xbf16>, vector<64x256xbf16>, vector<8x256xf32> -> vector<8x256xf32>
    %311 = arith.addf %308, %310 : vector<8x256xf32>
    %312 = arith.mulf %311, %10 : vector<8x256xf32>
    %313 = math.tanh %312 : vector<8x256xf32>
    %314 = arith.mulf %313, %10 : vector<8x256xf32>
    %315 = arith.addf %314, %15 : vector<8x256xf32>
    %316 = vector.extract_strided_slice %315 {offsets = [0, 0], sizes = [8, 64], strides = [1, 1]} : vector<8x256xf32> to vector<8x64xf32>
    %317 = vector.extract_strided_slice %315 {offsets = [0, 64], sizes = [8, 64], strides = [1, 1]} : vector<8x256xf32> to vector<8x64xf32>
    %318 = vector.extract_strided_slice %315 {offsets = [0, 128], sizes = [8, 64], strides = [1, 1]} : vector<8x256xf32> to vector<8x64xf32>
    %319 = vector.extract_strided_slice %315 {offsets = [0, 192], sizes = [8, 64], strides = [1, 1]} : vector<8x256xf32> to vector<8x64xf32>
    %320 = arith.mulf %317, %299 : vector<8x64xf32>
    %321 = arith.mulf %316, %318 : vector<8x64xf32>
    %322 = arith.addf %320, %321 : vector<8x64xf32>
    %323 = math.tanh %322 : vector<8x64xf32>
    %324 = arith.mulf %319, %323 : vector<8x64xf32>
    %325 = vector.extract_strided_slice %324 {offsets = [0, 0], sizes = [8, 32], strides = [1, 1]} : vector<8x64xf32> to vector<8x32xf32>
    %c32_76 = arith.constant 32 : index
    %c0_77 = arith.constant 0 : index
    %326 = vector.load %arg6[%c32_76, %c0_77] : memref<64x64xf32, #tpu.memory_space<vmem>>, vector<8x32xf32>
    tpu.vector_store %arg6[%c32_76, %c0_77], %325 {strides = array<i32>} : memref<64x64xf32, #tpu.memory_space<vmem>>, vector<8x32xf32>,
    %327 = vector.extract_strided_slice %324 {offsets = [0, 32], sizes = [8, 32], strides = [1, 1]} : vector<8x64xf32> to vector<8x32xf32>
    %c24_78 = arith.constant 24 : index
    %c32_79 = arith.constant 32 : index
    %328 = vector.load %arg6[%c24_78, %c32_79] : memref<64x64xf32, #tpu.memory_space<vmem>>, vector<8x32xf32>
    tpu.vector_store %arg6[%c24_78, %c32_79], %327 {strides = array<i32>} : memref<64x64xf32, #tpu.memory_space<vmem>>, vector<8x32xf32>,
    %329 = vector.extract_strided_slice %216 {offsets = [40, 0], sizes = [8, 256], strides = [1, 1]} : vector<64x256xf32> to vector<8x256xf32>
    %330 = vector.extract_strided_slice %219 {offsets = [16, 0], sizes = [8, 256], strides = [1, 1]} : vector<64x256xf32> to vector<8x256xf32>
    %331 = arith.addf %329, %330 : vector<8x256xf32>
    %332 = arith.truncf %324 : vector<8x64xf32> to vector<8x64xbf16>
    %cst_80 = arith.constant dense<0.000000e+00> : vector<8x256xf32>
    %333 = tpu.matmul %332, %209, %cst_80 {dimension_numbers = #tpu.dot_dimension_numbers<[1], [0], [0], [1], [0, 0, 1, 1], [], []>} : vector<8x64xbf16>, vector<64x256xbf16>, vector<8x256xf32> -> vector<8x256xf32>
    %334 = arith.addf %331, %333 : vector<8x256xf32>
    %335 = arith.mulf %334, %10 : vector<8x256xf32>
    %336 = math.tanh %335 : vector<8x256xf32>
    %337 = arith.mulf %336, %10 : vector<8x256xf32>
    %338 = arith.addf %337, %15 : vector<8x256xf32>
    %339 = vector.extract_strided_slice %338 {offsets = [0, 0], sizes = [8, 64], strides = [1, 1]} : vector<8x256xf32> to vector<8x64xf32>
    %340 = vector.extract_strided_slice %338 {offsets = [0, 64], sizes = [8, 64], strides = [1, 1]} : vector<8x256xf32> to vector<8x64xf32>
    %341 = vector.extract_strided_slice %338 {offsets = [0, 128], sizes = [8, 64], strides = [1, 1]} : vector<8x256xf32> to vector<8x64xf32>
    %342 = vector.extract_strided_slice %338 {offsets = [0, 192], sizes = [8, 64], strides = [1, 1]} : vector<8x256xf32> to vector<8x64xf32>
    %343 = arith.mulf %340, %322 : vector<8x64xf32>
    %344 = arith.mulf %339, %341 : vector<8x64xf32>
    %345 = arith.addf %343, %344 : vector<8x64xf32>
    %346 = math.tanh %345 : vector<8x64xf32>
    %347 = arith.mulf %342, %346 : vector<8x64xf32>
    %348 = vector.extract_strided_slice %347 {offsets = [0, 0], sizes = [8, 32], strides = [1, 1]} : vector<8x64xf32> to vector<8x32xf32>
    %c40_81 = arith.constant 40 : index
    %c0_82 = arith.constant 0 : index
    %349 = vector.load %arg6[%c40_81, %c0_82] : memref<64x64xf32, #tpu.memory_space<vmem>>, vector<8x32xf32>
    tpu.vector_store %arg6[%c40_81, %c0_82], %348 {strides = array<i32>} : memref<64x64xf32, #tpu.memory_space<vmem>>, vector<8x32xf32>,
    %350 = vector.extract_strided_slice %347 {offsets = [0, 32], sizes = [8, 32], strides = [1, 1]} : vector<8x64xf32> to vector<8x32xf32>
    %c16_83 = arith.constant 16 : index
    %c32_84 = arith.constant 32 : index
    %351 = vector.load %arg6[%c16_83, %c32_84] : memref<64x64xf32, #tpu.memory_space<vmem>>, vector<8x32xf32>
    tpu.vector_store %arg6[%c16_83, %c32_84], %350 {strides = array<i32>} : memref<64x64xf32, #tpu.memory_space<vmem>>, vector<8x32xf32>,
    %352 = vector.extract_strided_slice %216 {offsets = [48, 0], sizes = [8, 256], strides = [1, 1]} : vector<64x256xf32> to vector<8x256xf32>
    %353 = vector.extract_strided_slice %219 {offsets = [8, 0], sizes = [8, 256], strides = [1, 1]} : vector<64x256xf32> to vector<8x256xf32>
    %354 = arith.addf %352, %353 : vector<8x256xf32>
    %355 = arith.truncf %347 : vector<8x64xf32> to vector<8x64xbf16>
    %cst_85 = arith.constant dense<0.000000e+00> : vector<8x256xf32>
    %356 = tpu.matmul %355, %209, %cst_85 {dimension_numbers = #tpu.dot_dimension_numbers<[1], [0], [0], [1], [0, 0, 1, 1], [], []>} : vector<8x64xbf16>, vector<64x256xbf16>, vector<8x256xf32> -> vector<8x256xf32>
    %357 = arith.addf %354, %356 : vector<8x256xf32>
    %358 = arith.mulf %357, %10 : vector<8x256xf32>
    %359 = math.tanh %358 : vector<8x256xf32>
    %360 = arith.mulf %359, %10 : vector<8x256xf32>
    %361 = arith.addf %360, %15 : vector<8x256xf32>
    %362 = vector.extract_strided_slice %361 {offsets = [0, 0], sizes = [8, 64], strides = [1, 1]} : vector<8x256xf32> to vector<8x64xf32>
    %363 = vector.extract_strided_slice %361 {offsets = [0, 64], sizes = [8, 64], strides = [1, 1]} : vector<8x256xf32> to vector<8x64xf32>
    %364 = vector.extract_strided_slice %361 {offsets = [0, 128], sizes = [8, 64], strides = [1, 1]} : vector<8x256xf32> to vector<8x64xf32>
    %365 = vector.extract_strided_slice %361 {offsets = [0, 192], sizes = [8, 64], strides = [1, 1]} : vector<8x256xf32> to vector<8x64xf32>
    %366 = arith.mulf %363, %345 : vector<8x64xf32>
    %367 = arith.mulf %362, %364 : vector<8x64xf32>
    %368 = arith.addf %366, %367 : vector<8x64xf32>
    %369 = math.tanh %368 : vector<8x64xf32>
    %370 = arith.mulf %365, %369 : vector<8x64xf32>
    %371 = vector.extract_strided_slice %370 {offsets = [0, 0], sizes = [8, 32], strides = [1, 1]} : vector<8x64xf32> to vector<8x32xf32>
    %c48_86 = arith.constant 48 : index
    %c0_87 = arith.constant 0 : index
    %372 = vector.load %arg6[%c48_86, %c0_87] : memref<64x64xf32, #tpu.memory_space<vmem>>, vector<8x32xf32>
    tpu.vector_store %arg6[%c48_86, %c0_87], %371 {strides = array<i32>} : memref<64x64xf32, #tpu.memory_space<vmem>>, vector<8x32xf32>,
    %373 = vector.extract_strided_slice %370 {offsets = [0, 32], sizes = [8, 32], strides = [1, 1]} : vector<8x64xf32> to vector<8x32xf32>
    %c8_88 = arith.constant 8 : index
    %c32_89 = arith.constant 32 : index
    %374 = vector.load %arg6[%c8_88, %c32_89] : memref<64x64xf32, #tpu.memory_space<vmem>>, vector<8x32xf32>
    tpu.vector_store %arg6[%c8_88, %c32_89], %373 {strides = array<i32>} : memref<64x64xf32, #tpu.memory_space<vmem>>, vector<8x32xf32>,
    %375 = vector.extract_strided_slice %216 {offsets = [56, 0], sizes = [8, 256], strides = [1, 1]} : vector<64x256xf32> to vector<8x256xf32>
    %376 = vector.extract_strided_slice %219 {offsets = [0, 0], sizes = [8, 256], strides = [1, 1]} : vector<64x256xf32> to vector<8x256xf32>
    %377 = arith.addf %375, %376 : vector<8x256xf32>
    %378 = arith.truncf %370 : vector<8x64xf32> to vector<8x64xbf16>
    %cst_90 = arith.constant dense<0.000000e+00> : vector<8x256xf32>
    %379 = tpu.matmul %378, %209, %cst_90 {dimension_numbers = #tpu.dot_dimension_numbers<[1], [0], [0], [1], [0, 0, 1, 1], [], []>} : vector<8x64xbf16>, vector<64x256xbf16>, vector<8x256xf32> -> vector<8x256xf32>
    %380 = arith.addf %377, %379 : vector<8x256xf32>
    %381 = arith.mulf %380, %10 : vector<8x256xf32>
    %382 = math.tanh %381 : vector<8x256xf32>
    %383 = arith.mulf %382, %10 : vector<8x256xf32>
    %384 = arith.addf %383, %15 : vector<8x256xf32>
    %385 = vector.extract_strided_slice %384 {offsets = [0, 0], sizes = [8, 64], strides = [1, 1]} : vector<8x256xf32> to vector<8x64xf32>
    %386 = vector.extract_strided_slice %384 {offsets = [0, 64], sizes = [8, 64], strides = [1, 1]} : vector<8x256xf32> to vector<8x64xf32>
    %387 = vector.extract_strided_slice %384 {offsets = [0, 128], sizes = [8, 64], strides = [1, 1]} : vector<8x256xf32> to vector<8x64xf32>
    %388 = vector.extract_strided_slice %384 {offsets = [0, 192], sizes = [8, 64], strides = [1, 1]} : vector<8x256xf32> to vector<8x64xf32>
    %389 = arith.mulf %386, %368 : vector<8x64xf32>
    %390 = arith.mulf %385, %387 : vector<8x64xf32>
    %391 = arith.addf %389, %390 : vector<8x64xf32>
    %392 = math.tanh %391 : vector<8x64xf32>
    %393 = arith.mulf %388, %392 : vector<8x64xf32>
    %394 = vector.extract_strided_slice %393 {offsets = [0, 0], sizes = [8, 32], strides = [1, 1]} : vector<8x64xf32> to vector<8x32xf32>
    %c56_91 = arith.constant 56 : index
    %c0_92 = arith.constant 0 : index
    %395 = vector.load %arg6[%c56_91, %c0_92] : memref<64x64xf32, #tpu.memory_space<vmem>>, vector<8x32xf32>
    tpu.vector_store %arg6[%c56_91, %c0_92], %394 {strides = array<i32>} : memref<64x64xf32, #tpu.memory_space<vmem>>, vector<8x32xf32>,
    %396 = vector.extract_strided_slice %393 {offsets = [0, 32], sizes = [8, 32], strides = [1, 1]} : vector<8x64xf32> to vector<8x32xf32>
    %c0_93 = arith.constant 0 : index
    %c32_94 = arith.constant 32 : index
    %397 = vector.load %arg6[%c0_93, %c32_94] : memref<64x64xf32, #tpu.memory_space<vmem>>, vector<8x32xf32>
    tpu.vector_store %arg6[%c0_93, %c32_94], %396 {strides = array<i32>} : memref<64x64xf32, #tpu.memory_space<vmem>>, vector<8x32xf32>,
    %c0_95 = arith.constant 0 : index
    %c0_96 = arith.constant 0 : index
    %398 = vector.load %arg6[%c0_95, %c0_96] : memref<64x64xf32, #tpu.memory_space<vmem>>, vector<8x64xf32>
    %c0_97 = arith.constant 0 : index
    %c0_98 = arith.constant 0 : index
    %399 = vector.load %arg3[%c0_97, %c0_98] : memref<8x64xf32, #tpu.memory_space<vmem>>, vector<1x64xf32>
    %400 = vector.broadcast %399 : vector<1x64xf32> to vector<8x64xf32>
    %401 = arith.mulf %398, %400 : vector<8x64xf32>
    %c8_99 = arith.constant 8 : index
    %c0_100 = arith.constant 0 : index
    %402 = vector.load %arg6[%c8_99, %c0_100] : memref<64x64xf32, #tpu.memory_space<vmem>>, vector<8x64xf32>
    %c1_101 = arith.constant 1 : index
    %c0_102 = arith.constant 0 : index
    %403 = vector.load %arg3[%c1_101, %c0_102] : memref<8x64xf32, #tpu.memory_space<vmem>>, vector<1x64xf32>
    %404 = vector.broadcast %403 : vector<1x64xf32> to vector<8x64xf32>
    %405 = arith.mulf %402, %404 : vector<8x64xf32>
    %406 = arith.addf %401, %405 : vector<8x64xf32>
    %c16_103 = arith.constant 16 : index
    %c0_104 = arith.constant 0 : index
    %407 = vector.load %arg6[%c16_103, %c0_104] : memref<64x64xf32, #tpu.memory_space<vmem>>, vector<8x64xf32>
    %c2_105 = arith.constant 2 : index
    %c0_106 = arith.constant 0 : index
    %408 = vector.load %arg3[%c2_105, %c0_106] : memref<8x64xf32, #tpu.memory_space<vmem>>, vector<1x64xf32>
    %409 = vector.broadcast %408 : vector<1x64xf32> to vector<8x64xf32>
    %410 = arith.mulf %407, %409 : vector<8x64xf32>
    %411 = arith.addf %406, %410 : vector<8x64xf32>
    %c24_107 = arith.constant 24 : index
    %c0_108 = arith.constant 0 : index
    %412 = vector.load %arg6[%c24_107, %c0_108] : memref<64x64xf32, #tpu.memory_space<vmem>>, vector<8x64xf32>
    %c3_109 = arith.constant 3 : index
    %c0_110 = arith.constant 0 : index
    %413 = vector.load %arg3[%c3_109, %c0_110] : memref<8x64xf32, #tpu.memory_space<vmem>>, vector<1x64xf32>
    %414 = vector.broadcast %413 : vector<1x64xf32> to vector<8x64xf32>
    %415 = arith.mulf %412, %414 : vector<8x64xf32>
    %416 = arith.addf %411, %415 : vector<8x64xf32>
    %c32_111 = arith.constant 32 : index
    %c0_112 = arith.constant 0 : index
    %417 = vector.load %arg6[%c32_111, %c0_112] : memref<64x64xf32, #tpu.memory_space<vmem>>, vector<8x64xf32>
    %c4 = arith.constant 4 : index
    %c0_113 = arith.constant 0 : index
    %418 = vector.load %arg3[%c4, %c0_113] : memref<8x64xf32, #tpu.memory_space<vmem>>, vector<1x64xf32>
    %419 = vector.broadcast %418 : vector<1x64xf32> to vector<8x64xf32>
    %420 = arith.mulf %417, %419 : vector<8x64xf32>
    %421 = arith.addf %416, %420 : vector<8x64xf32>
    %c40_114 = arith.constant 40 : index
    %c0_115 = arith.constant 0 : index
    %422 = vector.load %arg6[%c40_114, %c0_115] : memref<64x64xf32, #tpu.memory_space<vmem>>, vector<8x64xf32>
    %c5 = arith.constant 5 : index
    %c0_116 = arith.constant 0 : index
    %423 = vector.load %arg3[%c5, %c0_116] : memref<8x64xf32, #tpu.memory_space<vmem>>, vector<1x64xf32>
    %424 = vector.broadcast %423 : vector<1x64xf32> to vector<8x64xf32>
    %425 = arith.mulf %422, %424 : vector<8x64xf32>
    %426 = arith.addf %421, %425 : vector<8x64xf32>
    %c48_117 = arith.constant 48 : index
    %c0_118 = arith.constant 0 : index
    %427 = vector.load %arg6[%c48_117, %c0_118] : memref<64x64xf32, #tpu.memory_space<vmem>>, vector<8x64xf32>
    %c6 = arith.constant 6 : index
    %c0_119 = arith.constant 0 : index
    %428 = vector.load %arg3[%c6, %c0_119] : memref<8x64xf32, #tpu.memory_space<vmem>>, vector<1x64xf32>
    %429 = vector.broadcast %428 : vector<1x64xf32> to vector<8x64xf32>
    %430 = arith.mulf %427, %429 : vector<8x64xf32>
    %431 = arith.addf %426, %430 : vector<8x64xf32>
    %c56_120 = arith.constant 56 : index
    %c0_121 = arith.constant 0 : index
    %432 = vector.load %arg6[%c56_120, %c0_121] : memref<64x64xf32, #tpu.memory_space<vmem>>, vector<8x64xf32>
    %c7 = arith.constant 7 : index
    %c0_122 = arith.constant 0 : index
    %433 = vector.load %arg3[%c7, %c0_122] : memref<8x64xf32, #tpu.memory_space<vmem>>, vector<1x64xf32>
    %434 = vector.broadcast %433 : vector<1x64xf32> to vector<8x64xf32>
    %435 = arith.mulf %432, %434 : vector<8x64xf32>
    %436 = arith.addf %431, %435 : vector<8x64xf32>
    %cst_123 = arith.constant dense<0.000000e+00> : vector<8xf32>
    %437 = vector.multi_reduction <add>, %436, %cst_123 [1] : vector<8x64xf32> to vector<8xf32>
    %438 = vector.shape_cast %437 : vector<8xf32> to vector<8x1xf32>
    %c0_124 = arith.constant 0 : index
    %c0_125 = arith.constant 0 : index
    %439 = vector.load %arg4[%c0_124, %c0_125] : memref<1x1xf32, #tpu.memory_space<vmem>>, vector<1x1xf32>
    %440 = vector.broadcast %439 : vector<1x1xf32> to vector<8x1xf32>
    %441 = arith.addf %438, %440 : vector<8x1xf32>
    %c0_126 = arith.constant 0 : index
    %c0_127 = arith.constant 0 : index
    %442 = vector.load %arg5[%c0_126, %c0_127] : memref<8x1xf32, #tpu.memory_space<vmem>>, vector<8x1xf32>
    tpu.vector_store %arg5[%c0_126, %c0_127], %441 {strides = array<i32>} : memref<8x1xf32, #tpu.memory_space<vmem>>, vector<8x1xf32>,
    return
  }
}

</mosaic_0001>

<bundles_post_ra>
// kernel: forward.1
= control target key start
LH: loop header
LB: loop body
LE: loop exit
PB: predicated region body
PF: predicated region fallthrough
CT: control target
= control target key end

     0   :  { %vm90_vm0 = vcmask 1043456   ;;  %v2063_v2 = vmov 0   ;;  %vm77_vm1 = vcmask 64512   ;;  %v23_v21 = vlaneseq  ;;  %s2065_s16 = smov 64   ;;  %s2863_s1 = inlined_call_operand.vmem [shape: bf16[288,256], index: 1, kind: input, shape index: {}]   ;;  %s2864_s0 = inlined_call_operand.vmem [shape: f32[64,8], index: 0, kind: input, shape index: {}]   ;;  %s2865_s2 = inlined_call_operand.vmem [shape: f32[4,256], index: 2, kind: input, shape index: {}]   ;;  %s2866_s4 = inlined_call_operand.<no memory space> [shape: f32[1,1], index: 4, kind: input, shape index: {}]   ;;  %s2867_s3 = inlined_call_operand.vmem [shape: f32[8,64], index: 3, kind: input, shape index: {}]   ;;  %s2868_s5 = inlined_call_operand.vmem [shape: f32[8,1], index: 5, kind: output, shape index: {}]  }
   0x1   :  { %v36_v0 = vld [vmem:[%s2863_s1] sm:$0xff]  ;;  %v37_v1 = vld [vmem:[%s2863_s1 + $0x10] sm:$0xff]  ;;  %129 = vmatprep.mubr.bf16.mxu0 %v2063_v2  ;;  %224 = vmatprep.mubr.bf16.mxu1 %v2063_v2  ;;  %v50_v8 = vld [vmem:[%s2864_s0 + $0x8] sm:$0xff]  ;;  %vm336_vm3 = vcmask 523264   ;;  %vm286_vm4 = vcmask 261120   ;;  %vm288_vm5 = vcmask 523520  }
   0x2   :  { %v49_v3 = vld [vmem:[%s2864_s0] sm:$0xff]  ;;  %v1834_v4 = vcombine.high %v36_v0, %v36_v0  ;;  %v1841_v5 = vcombine.high %v37_v1, %v37_v1  ;;  %v1833_v6 = vcombine.low %v36_v0, %v36_v0  ;;  %v1840_v7 = vcombine.low %v37_v1, %v37_v1  ;;  %v51_v12 = vld [vmem:[%s2864_s0 + $0x10] sm:$0xff]  ;;  %v52_v13 = vld [vmem:[%s2864_s0 + $0x18] sm:$0xff] }
   0x3   :  { %v57_v11 = vpack.c.bf16 %v50_v8, %v49_v3  ;;  %v58_v14 = vpack.c.bf16 %v52_v13, %v51_v12  ;;  %v53_v15 = vld [vmem:[%s2864_s0 + $0x20] sm:$0xff]  ;;  %v54_v16 = vld [vmem:[%s2864_s0 + $0x28] sm:$0xff]  ;;  %v55_v18 = vld [vmem:[%s2864_s0 + $0x30] sm:$0xff]  ;;  %v63_v22 = vshrl.u32 %v23_v21, 7  ;;  %vm1826_vm6 = vcmask 7168  }
   0x4   :  { %1835 = vmatprep.subr.msk.bf16.mxu0 %vm90_vm0, %v1834_v4  ;;  %1842 = vmatprep.subr.msk.bf16.mxu1 %vm90_vm0, %v1841_v5  ;;  %v92_v9 = vsel %vm90_vm0, %v1833_v6, 0  ;;  %v187_v10 = vsel %vm90_vm0, %v1840_v7, 0  ;;  %v59_v17 = vpack.c.bf16 %v54_v16, %v53_v15  ;;  %v56_v19 = vld [vmem:[%s2864_s0 + $0x38] sm:$0xff]  ;;  %v1832_v24 = vld [vmem:[%s2865_s2 + $0x1] ss:$4 sm:$0x3] }
   0x5   :  { %98 = vmatpush1.bf16.msra.mxu0 %v92_v9  ;;  %193 = vmatpush1.bf16.msra.mxu1 %v187_v10  ;;  %v60_v20 = vpack.c.bf16 %v56_v19, %v55_v18  ;;  %v2144_v23 = vsub.s32 0, %v63_v22  ;;  %v2149_v25 = vsub.s32 1, %v63_v22  ;;  %v46_v28 = vld [vmem:[%s2865_s2] ss:$4 sm:$0x3]  ;;  %v24_v4 = vand.u32 127, %v23_v21 }
   0x7   :  { %v2152_v26 = vrot.slane %v1832_v24, %v2144_v23  ;;  %v2155_v27 = vrot.slane %v1832_v24, %v2149_v25  ;;  %v2164_v33 = vrot.slane %v46_v28, %v2144_v23  ;;  %v2170_v37 = vrot.slane %v46_v28, %v2149_v25 }
   0x8   :  { %1836 = vmatmul.mubr.msk.bf16.vlgmr.msra.gmra.mrb[0].mxu0 %vm77_vm1, %v57_v11  ;;  %1843 = vmatmul.mubr.msk.bf16.vlgmr.msra.gmra.mrb[0].mxu1 %vm77_vm1, %v57_v11  ;;  %v25_v21 = vadd.s32 128, %v24_v4  ;;  %v2275_v4 = vld [vmem:[%s2863_s1 + $0x30] ss:$8 sps:$4 sm:$0xff]  }
   0x9   :  { %139 = vmatprep.mubr.bf16.mxu0 %v2063_v2  ;;  %234 = vmatprep.mubr.bf16.mxu1 %v2063_v2 }
   0xa   :  { %vm29_vm2 = vcmp.lt.s32.totalorder %v25_v21, 192 }
  0x10   :  { %1837 = vmatmul.mubr.msk.bf16.gmra.mrb[4].mxu0 %vm77_vm1, %v58_v14  ;;  %1844 = vmatmul.mubr.msk.bf16.gmra.mrb[4].mxu1 %vm77_vm1, %v58_v14 }
  0x11   :  { %149 = vmatprep.mubr.bf16.mxu0 %v2063_v2  ;;  %244 = vmatprep.mubr.bf16.mxu1 %v2063_v2 }
  0x18   :  { %1838 = vmatmul.mubr.msk.bf16.gmra.mrb[8].mxu0 %vm77_vm1, %v59_v17  ;;  %1845 = vmatmul.mubr.msk.bf16.gmra.mrb[8].mxu1 %vm77_vm1, %v59_v17 }
  0x19   :  { %159 = vmatprep.mubr.bf16.mxu0 %v2063_v2  ;;  %254 = vmatprep.mubr.bf16.mxu1 %v2063_v2 }
  0x20   :  { %1839 = vmatmul.mubr.msk.bf16.gmra.mrb[12].mxu0 %vm77_vm1, %v60_v20  ;;  %1846 = vmatmul.mubr.msk.bf16.gmra.mrb[12].mxu1 %vm77_vm1, %v60_v20 }
  0x21   :  { %372 = vmatprep.mubr.bf16.mxu0 %v2063_v2  ;;  %451 = vmatprep.mubr.bf16.mxu1 %v2063_v2 }
  0xdb   :  { %v226_v29 = vpop.f32.mrb[0].mxu1  ;;  %v131_v30 = vpop.f32.mrb[0].mxu0 }
  0xdc   :  { %v2161_v31 = vadd.f32 %v226_v29, %v2152_v26  ;;  %v228_v32 = vpop.f32.mrb[1].mxu1  ;;  %v133_v34 = vpop.f32.mrb[1].mxu0 }
  0xdd   :  { %v2167_v35 = vadd.f32 %v228_v32, %v2155_v27  ;;  %v230_v36 = vpop.f32.mrb[2].mxu1  ;;  %v135_v38 = vpop.f32.mrb[2].mxu0  ;;  %v132_v32 = vadd.f32 %v131_v30, %v2164_v33 }
  0xde   :  { %v2173_v39 = vadd.f32 %v230_v36, %v2152_v26  ;;  %v232_v40 = vpop.f32.mrb[3].mxu1  ;;  %v2176_v41 = vadd.f32 %v135_v38, %v2164_v33  ;;  %v137_v42 = vpop.f32.mrb[3].mxu0 }
  0xdf   :  { %v2179_v43 = vadd.f32 %v232_v40, %v2155_v27  ;;  %v2182_v44 = vadd.f32 %v137_v42, %v2170_v37 }
  0xe3   :  { %v236_v45 = vpop.f32.mrb[4].mxu1  ;;  %v141_v46 = vpop.f32.mrb[4].mxu0 }
  0xe4   :  { %v237_v47 = vadd.f32 %v236_v45, %v2152_v26  ;;  %v238_v48 = vpop.f32.mrb[5].mxu1  ;;  %v142_v49 = vadd.f32 %v141_v46, %v2164_v33  ;;  %v143_v50 = vpop.f32.mrb[5].mxu0  ;;  %v134_v45 = vadd.f32 %v133_v34, %v2170_v37 }
  0xe5   :  { %v239_v51 = vadd.f32 %v238_v48, %v2155_v27  ;;  %v240_v52 = vpop.f32.mrb[6].mxu1  ;;  %v144_v53 = vadd.f32 %v143_v50, %v2170_v37  ;;  %v145_v54 = vpop.f32.mrb[6].mxu0 }
  0xe6   :  { %v241_v55 = vadd.f32 %v240_v52, %v2152_v26  ;;  %v242_v56 = vpop.f32.mrb[7].mxu1  ;;  %v146_v57 = vadd.f32 %v145_v54, %v2164_v33  ;;  %v147_v58 = vpop.f32.mrb[7].mxu0 }
  0xe7   :  { %v243_v59 = vadd.f32 %v242_v56, %v2155_v27  ;;  %v148_v60 = vadd.f32 %v147_v58, %v2170_v37 }
  0xeb   :  { %v151_v61 = vpop.f32.mrb[8].mxu0  ;;  %v246_v62 = vpop.f32.mrb[8].mxu1 }
  0xec   :  { %v152_v63 = vadd.f32 %v151_v61, %v2164_v33  ;;  %v247_v0 = vadd.f32 %v246_v62, %v2152_v26  ;;  %v153_v1 = vpop.f32.mrb[9].mxu0  ;;  %v248_v3 = vpop.f32.mrb[9].mxu1 }
  0xed   :  { %v154_v5 = vadd.f32 %v153_v1, %v2170_v37  ;;  %v249_v6 = vadd.f32 %v248_v3, %v2155_v27  ;;  %v155_v7 = vpop.f32.mrb[10].mxu0  ;;  %v250_v8 = vpop.f32.mrb[10].mxu1  ;;  %v2262_v1 = vld [vmem:[%s2863_s1 + $0x20] ss:$8 sps:$4 sm:$0xff]   ;;  %v2267_v3 = vld [vmem:[%s2863_s1 + $0x34] ss:$8 sps:$4 sm:$0xff]  }
  0xee   :  { %v156_v9 = vadd.f32 %v155_v7, %v2164_v33  ;;  %v251_v10 = vadd.f32 %v250_v8, %v2152_v26  ;;  %v157_v11 = vpop.f32.mrb[11].mxu0  ;;  %v252_v12 = vpop.f32.mrb[11].mxu1  ;;  %v2198_v13 = vadd.f32 %v247_v0, %v146_v57  ;;  %v2200_v14 = vadd.f32 %v241_v55, %v152_v63  ;;  %v2296_v8 = vld [vmem:[%s2863_s1 + $0x54] ss:$8 sps:$4 sm:$0xff]  }
  0xef   :  { %v158_v15 = vadd.f32 %v157_v11, %v2170_v37  ;;  %v253_v16 = vadd.f32 %v252_v12, %v2155_v27  ;;  %v2204_v17 = vadd.f32 %v249_v6, %v148_v60  ;;  %v2206_v18 = vadd.f32 %v243_v59, %v154_v5  ;;  %v2282_v5 = vld [vmem:[%s2863_s1 + $0x44] ss:$8 sps:$4 sm:$0xff]   ;;  %v2289_v6 = vld [vmem:[%s2863_s1 + $0x40] ss:$8 sps:$4 sm:$0xff]  }
  0xf0   :  { %v2208_v19 = vadd.f32 %v251_v10, %v142_v49  ;;  %v2210_v20 = vadd.f32 %v237_v47, %v156_v9  ;;  %v2304_v9 = vld [vmem:[%s2863_s1 + $0x50] ss:$8 sps:$4 sm:$0xff]  }
  0xf1   :  { %v2212_v22 = vadd.f32 %v253_v16, %v144_v53  ;;  %v2214_v24 = vadd.f32 %v239_v51, %v158_v15 }
  0xf3   :  { %v161_v28 = vpop.f32.mrb[12].mxu0  ;;  %v256_v29 = vpop.f32.mrb[12].mxu1 }
  0xf4   :  { %v162_v36 = vadd.f32 %v161_v28, %v2164_v33  ;;  %v257_v38 = vadd.f32 %v256_v29, %v2152_v26  ;;  %v163_v40 = vpop.f32.mrb[13].mxu0  ;;  %v258_v42 = vpop.f32.mrb[13].mxu1 }
  0xf5   :  { %v164_v46 = vadd.f32 %v163_v40, %v2170_v37  ;;  %v259_v47 = vadd.f32 %v258_v42, %v2155_v27  ;;  %v165_v48 = vpop.f32.mrb[14].mxu0  ;;  %v260_v49 = vpop.f32.mrb[14].mxu1 }
  0xf6   :  { %v166_v50 = vadd.f32 %v165_v48, %v2164_v33  ;;  %v261_v51 = vadd.f32 %v260_v49, %v2152_v26  ;;  %v167_v30 = vpop.f32.mrb[15].mxu0  ;;  %v262_v52 = vpop.f32.mrb[15].mxu1  ;;  %v2225_v53 = vadd.f32 %v257_v38, %v2176_v41  ;;  %v2228_v54 = vadd.f32 %v2173_v39, %v162_v36 }
  0xf7   :  { %v168_v34 = vadd.f32 %v167_v30, %v2170_v37  ;;  %v263_v55 = vadd.f32 %v262_v52, %v2155_v27  ;;  %v2233_v56 = vadd.f32 %v259_v47, %v2182_v44  ;;  %v2236_v57 = vadd.f32 %v2179_v43, %v164_v46 }
  0xf8   :  { %v2064_v33 = vmov 0.5   ;;  %v265_v58 = vadd.f32 %v261_v51, %v132_v32  ;;  %v2242_v41 = vadd.f32 %v2161_v31, %v166_v50 }
  0xf9   :  { %v2239_v26 = vsel %vm29_vm2, 1.0, %v2064_v33  ;;  %v266_v39 = vadd.f32 %v263_v55, %v134_v45  ;;  %v2245_v59 = vadd.f32 %v2167_v35, %v168_v34  ;;  %v2249_v60 = vsel %vm29_vm2, 0.0, %v2064_v33  ;;  %v2257_v35 = vld [vmem:[%s2863_s1 + $0x24] ss:$8 sps:$4 sm:$0xff]  }
  0xfa   :  { %v267_v37 = vmul.f32 0.5, %v265_v58  ;;  %340 = vmatprep.subr.bf16.mxu0 %v2257_v35  ;;  %419 = vmatprep.subr.bf16.mxu1 %v2257_v35 }
  0xfb   :  { %v268_v27 = vmul.f32 %v266_v39, %v2239_v26  ;;  %341 = vmatpush1.bf16.msra.mxu0 %v2262_v1  ;;  %420 = vmatpush1.bf16.msra.mxu1 %v2262_v1 }
  0xfc   :  { %1967 = vtanh.f32 %v267_v37  ;;  %342 = vmatprep.subr.bf16.mxu0 %v2267_v3  ;;  %421 = vmatprep.subr.bf16.mxu1 %v2267_v3 }
  0xfd   :  { %1969 = vtanh.f32 %v268_v27 }
  0xff   :  { %343 = vmatpush1.bf16.msra.mxu0 %v2275_v4  ;;  %422 = vmatpush1.bf16.msra.mxu1 %v2275_v4 }
 0x100   :  { %344 = vmatprep.subr.bf16.mxu0 %v2282_v5  ;;  %423 = vmatprep.subr.bf16.mxu1 %v2282_v5 }
 0x103   :  { %345 = vmatpush1.bf16.msra.mxu0 %v2289_v6  ;;  %424 = vmatpush1.bf16.msra.mxu1 %v2289_v6 }
 0x104   :  { %346 = vmatprep.subr.bf16.mxu0 %v2296_v8  ;;  %425 = vmatprep.subr.bf16.mxu1 %v2296_v8 }
 0x106   :  { %v1968_v44 = vpop.eup %1967 }
 0x107   :  { %v1970_v43 = vpop.eup %1969  ;;  %v271_v61 = vmul.f32 0.5, %v1968_v44  ;;  %347 = vmatpush1.bf16.msra.mxu0 %v2304_v9  ;;  %426 = vmatpush1.bf16.msra.mxu1 %v2304_v9 }
 0x108   :  { %v272_v62 = vmul.f32 %v1970_v43, %v2239_v26  ;;  %494 = vmatprep.subr.bf16.mxu0 %v2257_v35  ;;  %569 = vmatprep.subr.bf16.mxu1 %v2257_v35 }
 0x109   :  { %v273_v63 = vadd.f32 0.5, %v271_v61 }
 0x10a   :  { %v274_v31 = vadd.f32 %v272_v62, %v2249_v60 }
 0x10c   :  { %v275_v0 = vmul.f32 %v274_v31, %v273_v63 }
 0x10e   :  { %392 = vrot.lane.b32.xlu1 %v275_v0, %s2065_s16  ;;  %1971 = vtanh.f32 %v275_v0 }
 0x118   :  { %v1972_v7 = vpop.eup %1971 }
 0x119   :  { %278 = vrot.lane.b32.xlu0 %v1972_v7, %s2065_s16 }
 0x180   :  { %v393_v51 = vpop.permute.xlu1 %392 }
 0x18b   :  { %v279_v10 = vpop.permute.xlu0 %278 }
 0x18c   :  { %v2313_v11 = vmul.f32 %v279_v10, %v274_v31 }
 0x18e   :  { %v292_v12 = vpack.c.bf16 %v2313_v11, %v2313_v11 }
 0x190   :  { %294 = vrot.lane.b32.xlu0 %v292_v12, %s2065_s16 }
 0x202   :  { %v295_v15 = vpop.permute.xlu0 %294 }
 0x203   :  { %1855 = vmatmul.mubr.msk.bf16.vlgmr.msra.gmra.mrb[16].mxu0 %vm336_vm3, %v295_v15 }
 0x204   :  { %495 = vmatpush1.bf16.msra.mxu0 %v2262_v1  ;;  %526 = vmatprep.mubr.bf16.mxu0 %v2063_v2 }
 0x205   :  { %496 = vmatprep.subr.bf16.mxu0 %v2267_v3 }
 0x208   :  { %497 = vmatpush1.bf16.msra.mxu0 %v2275_v4 }
 0x209   :  { %498 = vmatprep.subr.bf16.mxu0 %v2282_v5 }
 0x20c   :  { %499 = vmatpush1.bf16.msra.mxu0 %v2289_v6 }
 0x20d   :  { %500 = vmatprep.subr.bf16.mxu0 %v2296_v8 }
 0x210   :  { %501 = vmatpush1.bf16.msra.mxu0 %v2304_v9 }
 0x211   :  { %644 = vmatprep.subr.bf16.mxu0 %v2257_v35 }
 0x2d6   :  { %v374_v16 = vpop.f32.mrb[16].mxu0 }
 0x2d7   :  { %v381_v21 = vadd.f32 %v374_v16, %v2225_v53  ;;  %v376_v28 = vpop.f32.mrb[17].mxu0 }
 0x2d8   :  { %v382_v29 = vadd.f32 %v376_v28, %v2233_v56  ;;  %v378_v32 = vpop.f32.mrb[18].mxu0 }
 0x2d9   :  { %v383_v36 = vmul.f32 0.5, %v381_v21  ;;  %v379_v38 = vpop.f32.mrb[19].mxu0 }
 0x2da   :  { %v384_v40 = vmul.f32 %v382_v29, %v2239_v26 }
 0x2db   :  { %1973 = vtanh.f32 %v383_v36 }
 0x2dc   :  { %1975 = vtanh.f32 %v384_v40 }
 0x2e5   :  { %v1974_v42 = vpop.eup %1973 }
 0x2e6   :  { %v1976_v45 = vpop.eup %1975  ;;  %v387_v46 = vmul.f32 0.5, %v1974_v42 }
 0x2e7   :  { %v388_v47 = vmul.f32 %v1976_v45, %v2239_v26 }
 0x2e8   :  { %v389_v48 = vadd.f32 0.5, %v387_v46 }
 0x2e9   :  { %v390_v49 = vadd.f32 %v388_v47, %v2249_v60 }
 0x2ea   :  { %v395_v30 = vmul.f32 %v393_v51, %v389_v48 }
 0x2eb   :  { %v396_v50 = vmul.f32 %v390_v49, %v389_v48 }
 0x2ed   :  { %398 = vrot.lane.b32.xlu1 %v396_v50, %s2065_s16 }
 0x35f   :  { %v399_v52 = vpop.permute.xlu1 %398 }
 0x360   :  { %v401_v53 = vadd.f32 %v399_v52, %v395_v30 }
 0x362   :  { %1977 = vtanh.f32 %v401_v53 }
 0x36c   :  { %v1978_v34 = vpop.eup %1977 }
 0x36d   :  { %v2334_v55 = vmul.f32 %v1978_v34, %v390_v49 }
 0x36f   :  { %v412_v56 = vpack.c.bf16 %v2334_v55, %v2334_v55 }
 0x371   :  { %414 = vrot.lane.b32.xlu0 %v412_v56, %s2065_s16 }
 0x3e3   :  { %v415_v33 = vpop.permute.xlu0 %414 }
 0x3e4   :  { %1856 = vmatmul.mubr.msk.bf16.vlgmr.msra.gmra.mrb[16].mxu1 %vm336_vm3, %v415_v33 }
 0x3e5   :  { %570 = vmatpush1.bf16.msra.mxu1 %v2262_v1  ;;  %601 = vmatprep.mubr.bf16.mxu1 %v2063_v2 }
 0x3e6   :  { %571 = vmatprep.subr.bf16.mxu1 %v2267_v3 }
 0x3e9   :  { %572 = vmatpush1.bf16.msra.mxu1 %v2275_v4 }
 0x3ea   :  { %573 = vmatprep.subr.bf16.mxu1 %v2282_v5 }
 0x3ed   :  { %574 = vmatpush1.bf16.msra.mxu1 %v2289_v6 }
 0x3ee   :  { %575 = vmatprep.subr.bf16.mxu1 %v2296_v8 }
 0x3f1   :  { %576 = vmatpush1.bf16.msra.mxu1 %v2304_v9 }
 0x3f2   :  { %719 = vmatprep.subr.bf16.mxu1 %v2257_v35 }
 0x4b7   :  { %v453_v58 = vpop.f32.mrb[16].mxu1 }
 0x4b8   :  { %v460_v39 = vadd.f32 %v453_v58, %v2208_v19  ;;  %v455_v37 = vpop.f32.mrb[17].mxu1 }
 0x4b9   :  { %v461_v27 = vadd.f32 %v455_v37, %v2212_v22  ;;  %v457_v44 = vpop.f32.mrb[18].mxu1 }
 0x4ba   :  { %v462_v43 = vmul.f32 0.5, %v460_v39  ;;  %v458_v61 = vpop.f32.mrb[19].mxu1 }
 0x4bb   :  { %v463_v62 = vmul.f32 %v461_v27, %v2239_v26 }
 0x4bc   :  { %1979 = vtanh.f32 %v462_v43 }
 0x4bd   :  { %1981 = vtanh.f32 %v463_v62 }
 0x4c6   :  { %v1980_v63 = vpop.eup %1979 }
 0x4c7   :  { %v1982_v31 = vpop.eup %1981  ;;  %v466_v0 = vmul.f32 0.5, %v1980_v63 }
 0x4c8   :  { %v467_v7 = vmul.f32 %v1982_v31, %v2239_v26 }
 0x4c9   :  { %v468_v10 = vadd.f32 0.5, %v466_v0 }
 0x4ca   :  { %v469_v12 = vadd.f32 %v467_v7, %v2249_v60 }
 0x4cb   :  { %v470_v19 = vmul.f32 %v468_v10, %v401_v53 }
 0x4cc   :  { %v471_v15 = vmul.f32 %v469_v12, %v468_v10 }
 0x4ce   :  { %473 = vrot.lane.b32.xlu1 %v471_v15, %s2065_s16 }
 0x540   :  { %v474_v22 = vpop.permute.xlu1 %473 }
 0x541   :  { %v476_v16 = vadd.f32 %v474_v22, %v470_v19 }
 0x543   :  { %1983 = vtanh.f32 %v476_v16 }
 0x54d   :  { %v1984_v21 = vpop.eup %1983 }
 0x54e   :  { %v2355_v28 = vmul.f32 %v1984_v21, %v469_v12 }
 0x550   :  { %v487_v29 = vpack.c.bf16 %v2355_v28, %v2355_v28 }
 0x552   :  { %489 = vrot.lane.b32.xlu0 %v487_v29, %s2065_s16 }
 0x5c4   :  { %v490_v32 = vpop.permute.xlu0 %489 }
 0x5c5   :  { %1857 = vmatmul.mubr.msk.bf16.vlgmr.msra.gmra.mrb[20].mxu0 %vm336_vm3, %v490_v32 }
 0x5c6   :  { %645 = vmatpush1.bf16.msra.mxu0 %v2262_v1  ;;  %676 = vmatprep.mubr.bf16.mxu0 %v2063_v2 }
 0x5c7   :  { %646 = vmatprep.subr.bf16.mxu0 %v2267_v3 }
 0x5ca   :  { %647 = vmatpush1.bf16.msra.mxu0 %v2275_v4 }
 0x5cb   :  { %648 = vmatprep.subr.bf16.mxu0 %v2282_v5 }
 0x5ce   :  { %649 = vmatpush1.bf16.msra.mxu0 %v2289_v6 }
 0x5cf   :  { %650 = vmatprep.subr.bf16.mxu0 %v2296_v8 }
 0x5d2   :  { %651 = vmatpush1.bf16.msra.mxu0 %v2304_v9 }
 0x5d3   :  { %794 = vmatprep.subr.bf16.mxu0 %v2257_v35 }
 0x698   :  { %v528_v36 = vpop.f32.mrb[20].mxu0 }
 0x699   :  { %v535_v38 = vadd.f32 %v528_v36, %v2198_v13  ;;  %v530_v40 = vpop.f32.mrb[21].mxu0 }
 0x69a   :  { %v536_v42 = vadd.f32 %v530_v40, %v2204_v17  ;;  %v532_v45 = vpop.f32.mrb[22].mxu0 }
 0x69b   :  { %v537_v46 = vmul.f32 0.5, %v535_v38  ;;  %v533_v47 = vpop.f32.mrb[23].mxu0 }
 0x69c   :  { %v538_v48 = vmul.f32 %v536_v42, %v2239_v26 }
 0x69d   :  { %1985 = vtanh.f32 %v537_v46 }
 0x69e   :  { %1987 = vtanh.f32 %v538_v48 }
 0x6a7   :  { %v1986_v49 = vpop.eup %1985 }
 0x6a8   :  { %v1988_v50 = vpop.eup %1987  ;;  %v541_v51 = vmul.f32 0.5, %v1986_v49 }
 0x6a9   :  { %v542_v30 = vmul.f32 %v1988_v50, %v2239_v26 }
 0x6aa   :  { %v543_v52 = vadd.f32 0.5, %v541_v51 }
 0x6ab   :  { %v544_v35 = vadd.f32 %v542_v30, %v2249_v60 }
 0x6ac   :  { %v545_v13 = vmul.f32 %v543_v52, %v476_v16 }
 0x6ad   :  { %v546_v53 = vmul.f32 %v544_v35, %v543_v52 }
 0x6af   :  { %548 = vrot.lane.b32.xlu1 %v546_v53, %s2065_s16 }
 0x721   :  { %v549_v17 = vpop.permute.xlu1 %548 }
 0x722   :  { %v551_v34 = vadd.f32 %v549_v17, %v545_v13 }
 0x724   :  { %1989 = vtanh.f32 %v551_v34 }
 0x72e   :  { %v1990_v56 = vpop.eup %1989 }
 0x72f   :  { %v2376_v33 = vmul.f32 %v1990_v56, %v544_v35 }
 0x731   :  { %v562_v58 = vpack.c.bf16 %v2376_v33, %v2376_v33 }
 0x733   :  { %564 = vrot.lane.b32.xlu0 %v562_v58, %s2065_s16 }
 0x7a5   :  { %v565_v39 = vpop.permute.xlu0 %564 }
 0x7a6   :  { %1858 = vmatmul.mubr.msk.bf16.vlgmr.msra.gmra.mrb[20].mxu1 %vm336_vm3, %v565_v39 }
 0x7a7   :  { %720 = vmatpush1.bf16.msra.mxu1 %v2262_v1  ;;  %751 = vmatprep.mubr.bf16.mxu1 %v2063_v2 }
 0x7a8   :  { %721 = vmatprep.subr.bf16.mxu1 %v2267_v3 }
 0x7ab   :  { %722 = vmatpush1.bf16.msra.mxu1 %v2275_v4 }
 0x7ac   :  { %723 = vmatprep.subr.bf16.mxu1 %v2282_v5 }
 0x7af   :  { %724 = vmatpush1.bf16.msra.mxu1 %v2289_v6 }
 0x7b0   :  { %725 = vmatprep.subr.bf16.mxu1 %v2296_v8 }
 0x7b3   :  { %726 = vmatpush1.bf16.msra.mxu1 %v2304_v9 }
 0x879   :  { %v603_v37 = vpop.f32.mrb[20].mxu1 }
 0x87a   :  { %v610_v27 = vadd.f32 %v603_v37, %v2200_v14  ;;  %v605_v44 = vpop.f32.mrb[21].mxu1 }
 0x87b   :  { %v611_v43 = vadd.f32 %v605_v44, %v2206_v18  ;;  %v607_v61 = vpop.f32.mrb[22].mxu1 }
 0x87c   :  { %v612_v62 = vmul.f32 0.5, %v610_v27  ;;  %v608_v63 = vpop.f32.mrb[23].mxu1 }
 0x87d   :  { %v613_v31 = vmul.f32 %v611_v43, %v2239_v26 }
 0x87e   :  { %1991 = vtanh.f32 %v612_v62 }
 0x87f   :  { %1993 = vtanh.f32 %v613_v31 }
 0x888   :  { %v1992_v0 = vpop.eup %1991 }
 0x889   :  { %v1994_v7 = vpop.eup %1993  ;;  %v616_v10 = vmul.f32 0.5, %v1992_v0 }
 0x88a   :  { %v617_v12 = vmul.f32 %v1994_v7, %v2239_v26 }
 0x88b   :  { %v618_v15 = vadd.f32 0.5, %v616_v10 }
 0x88c   :  { %v619_v19 = vadd.f32 %v617_v12, %v2249_v60 }
 0x88d   :  { %v620_v14 = vmul.f32 %v618_v15, %v551_v34 }
 0x88e   :  { %v621_v22 = vmul.f32 %v619_v19, %v618_v15 }
 0x890   :  { %623 = vrot.lane.b32.xlu1 %v621_v22, %s2065_s16 }
 0x902   :  { %v624_v18 = vpop.permute.xlu1 %623 }
 0x903   :  { %v626_v16 = vadd.f32 %v624_v18, %v620_v14 }
 0x905   :  { %1995 = vtanh.f32 %v626_v16 }
 0x90f   :  { %v1996_v21 = vpop.eup %1995 }
 0x910   :  { %v2396_v29 = vmul.f32 %v1996_v21, %v619_v19 }
 0x912   :  { %v637_v32 = vpack.c.bf16 %v2396_v29, %v2396_v29 }
 0x914   :  { %639 = vrot.lane.b32.xlu0 %v637_v32, %s2065_s16 }
 0x986   :  { %v640_v36 = vpop.permute.xlu0 %639 }
 0x987   :  { %1859 = vmatmul.mubr.msk.bf16.vlgmr.msra.gmra.mrb[24].mxu0 %vm336_vm3, %v640_v36 }
 0x988   :  { %795 = vmatpush1.bf16.msra.mxu0 %v2262_v1  ;;  %826 = vmatprep.mubr.bf16.mxu0 %v2063_v2 }
 0x989   :  { %796 = vmatprep.subr.bf16.mxu0 %v2267_v3 }
 0x98c   :  { %797 = vmatpush1.bf16.msra.mxu0 %v2275_v4 }
 0x98d   :  { %798 = vmatprep.subr.bf16.mxu0 %v2282_v5 }
 0x990   :  { %799 = vmatpush1.bf16.msra.mxu0 %v2289_v6 }
 0x991   :  { %800 = vmatprep.subr.bf16.mxu0 %v2296_v8 }
 0x994   :  { %801 = vmatpush1.bf16.msra.mxu0 %v2304_v9 }
 0xa5a   :  { %v678_v38 = vpop.f32.mrb[24].mxu0 }
 0xa5b   :  { %v685_v40 = vadd.f32 %v678_v38, %v2210_v20  ;;  %v680_v42 = vpop.f32.mrb[25].mxu0 }
 0xa5c   :  { %v686_v1 = vadd.f32 %v680_v42, %v2214_v24  ;;  %v682_v45 = vpop.f32.mrb[26].mxu0 }
 0xa5d   :  { %v687_v46 = vmul.f32 0.5, %v685_v40  ;;  %v683_v47 = vpop.f32.mrb[27].mxu0 }
 0xa5e   :  { %v688_v3 = vmul.f32 %v686_v1, %v2239_v26 }
 0xa5f   :  { %1997 = vtanh.f32 %v687_v46 }
 0xa60   :  { %1999 = vtanh.f32 %v688_v3  ;;  %v1934_v3 = vld [vmem:[%s2863_s1 + $0xa0] ss:$8 sps:$4 sm:$0xff]  }
 0xa69   :  { %v1998_v4 = vpop.eup %1997 }
 0xa6a   :  { %v2000_v5 = vpop.eup %1999  ;;  %v691_v6 = vmul.f32 0.5, %v1998_v4  ;;  %v1936_v4 = vld [vmem:[%s2863_s1 + $0xa4] ss:$8 sps:$4 sm:$0xff]  }
 0xa6b   :  { %v692_v8 = vmul.f32 %v2000_v5, %v2239_v26  ;;  %v1942_v5 = vld [vmem:[%s2863_s1 + $0xb4] ss:$8 sps:$4 sm:$0xff]   ;;  %1087 = vmatprep.subr.bf16.mxu0 %v1936_v4 }
 0xa6c   :  { %v693_v48 = vadd.f32 0.5, %v691_v6  ;;  %v1937_v6 = vld [vmem:[%s2863_s1 + $0x70] ss:$8 sps:$4 sm:$0xff]  }
 0xa6d   :  { %v694_v9 = vadd.f32 %v692_v8, %v2249_v60  ;;  %v1940_v8 = vld [vmem:[%s2863_s1 + $0xb0] ss:$8 sps:$4 sm:$0xff]  }
 0xa6e   :  { %v695_v20 = vmul.f32 %v693_v48, %v626_v16 }
 0xa6f   :  { %v696_v49 = vmul.f32 %v694_v9, %v693_v48 }
 0xa71   :  { %698 = vrot.lane.b32.xlu1 %v696_v49, %s2065_s16 }
 0xae3   :  { %v699_v24 = vpop.permute.xlu1 %698 }
 0xae4   :  { %v701_v50 = vadd.f32 %v699_v24, %v695_v20  ;;  %v1943_v20 = vld [vmem:[%s2863_s1 + $0x80] ss:$8 sps:$4 sm:$0xff]   ;;  %v1945_v24 = vld [vmem:[%s2863_s1 + $0x84] ss:$8 sps:$4 sm:$0xff]  }
 0xae6   :  { %2001 = vtanh.f32 %v701_v50 }
 0xaf0   :  { %v2002_v51 = vpop.eup %2001 }
 0xaf1   :  { %v2416_v30 = vmul.f32 %v2002_v51, %v694_v9 }
 0xaf3   :  { %v712_v52 = vpack.c.bf16 %v2416_v30, %v2416_v30 }
 0xaf5   :  { %714 = vrot.lane.b32.xlu0 %v712_v52, %s2065_s16  ;;  %v1948_v52 = vld [vmem:[%s2863_s1 + $0xc4] ss:$8 sps:$4 sm:$0xff]  }
 0xb67   :  { %v715_v35 = vpop.permute.xlu0 %714 }
 0xb68   :  { %1860 = vmatmul.mubr.msk.bf16.vlgmr.msra.gmra.mrb[24].mxu1 %vm336_vm3, %v715_v35  ;;  %v1951_v35 = vld [vmem:[%s2863_s1 + $0x94] ss:$8 sps:$4 sm:$0xff]  }
 0xb69   :  { %995 = vmatprep.mubr.bf16.mxu1 %v2063_v2 }
 0xc3b   :  { %v753_v53 = vpop.f32.mrb[24].mxu1 }
 0xc3c   :  { %v760_v13 = vadd.f32 %v753_v53, %v2228_v54  ;;  %v755_v17 = vpop.f32.mrb[25].mxu1  ;;  %v1954_v53 = vld [vmem:[%s2863_s1 + $0xd4] ss:$8 sps:$4 sm:$0xff]  }
 0xc3d   :  { %v761_v34 = vadd.f32 %v755_v17, %v2236_v57  ;;  %v757_v56 = vpop.f32.mrb[26].mxu1  ;;  %v1952_v17 = vld [vmem:[%s2863_s1 + $0xd0] ss:$8 sps:$4 sm:$0xff]  }
 0xc3e   :  { %v762_v58 = vmul.f32 0.5, %v760_v13  ;;  %v758_v39 = vpop.f32.mrb[27].mxu1  ;;  %v1949_v13 = vld [vmem:[%s2863_s1 + $0x90] ss:$8 sps:$4 sm:$0xff]  }
 0xc3f   :  { %v763_v37 = vmul.f32 %v761_v34, %v2239_v26 }
 0xc40   :  { %2003 = vtanh.f32 %v762_v58 }
 0xc41   :  { %2005 = vtanh.f32 %v763_v37 }
 0xc4a   :  { %v2004_v27 = vpop.eup %2003 }
 0xc4b   :  { %v2006_v44 = vpop.eup %2005  ;;  %v766_v43 = vmul.f32 0.5, %v2004_v27 }
 0xc4c   :  { %v767_v61 = vmul.f32 %v2006_v44, %v2239_v26 }
 0xc4d   :  { %v768_v62 = vadd.f32 0.5, %v766_v43 }
 0xc4e   :  { %v769_v63 = vadd.f32 %v767_v61, %v2249_v60 }
 0xc4f   :  { %v770_v54 = vmul.f32 %v768_v62, %v701_v50  ;;  %v1946_v50 = vld [vmem:[%s2863_s1 + $0xc0] ss:$8 sps:$4 sm:$0xff]  }
 0xc50   :  { %v771_v31 = vmul.f32 %v769_v63, %v768_v62 }
 0xc52   :  { %773 = vrot.lane.b32.xlu1 %v771_v31, %s2065_s16 }
 0xcc4   :  { %v774_v57 = vpop.permute.xlu1 %773 }
 0xcc5   :  { %v776_v0 = vadd.f32 %v774_v57, %v770_v54 }
 0xcc7   :  { %2007 = vtanh.f32 %v776_v0 }
 0xcd1   :  { %v2008_v7 = vpop.eup %2007 }
 0xcd2   :  { %v778_v10 = vmul.f32 %v2008_v7, %v769_v63 }
 0xcd4   :  { %v787_v12 = vpack.c.bf16 %v778_v10, %v778_v10 }
 0xcd6   :  { %789 = vrot.lane.b32.xlu0 %v787_v12, %s2065_s16 }
 0xcda   :  { %283 = vrot.lane.b32.xlu0 %v2313_v11, %s2065_s16 }
 0xcde   :  { %780 = vrot.lane.b32.xlu0 %v778_v10, %s2065_s16  ;;  %v1863_v10 = vld [vmem:[%s2865_s2 + $0x3] ss:$4 sm:$0x3] }
 0xcdf   :  { %v2536_v12 = vrot.slane %v1863_v10, %v2144_v23 }
 0xce2   :  { %480 = vrot.lane.b32.xlu0 %v2355_v28, %s2065_s16 }
 0xce6   :  { %630 = vrot.lane.b32.xlu0 %v2396_v29, %s2065_s16 }
 0xd48   :  { %v790_v15 = vpop.permute.xlu0 %789 }
 0xd49   :  { %1861 = vmatmul.mubr.msk.bf16.vlgmr.msra.gmra.mrb[28].mxu0 %vm336_vm3, %v790_v15  ;;  %v1862_v15 = vld [vmem:[%s2865_s2 + $0x2] ss:$4 sm:$0x3] }
 0xd4a   :  { %1119 = vmatprep.mubr.bf16.mxu0 %v2063_v2  ;;  %1088 = vmatpush1.bf16.msra.mxu0 %v1934_v3 }
 0xd4b   :  { %1089 = vmatprep.subr.bf16.mxu0 %v1942_v5 }
 0xd4c   :  { %v284_v19 = vpop.permute.xlu0 %283 }
 0xd4d   :  { %287 = vst.msk [vmem:[#allocation2] sm:$0xff] %vm286_vm4, %v284_v19 }
 0xd4e   :  { %289 = vst.msk [vmem:[#allocation2 + $0x38] sm:$0xff] %vm288_vm5, %v284_v19  ;;  %1090 = vmatpush1.bf16.msra.mxu0 %v1940_v8  ;;  %v2542_v19 = vrot.slane %v1863_v10, %v2149_v25 }
 0xd4f   :  { %1091 = vmatprep.subr.bf16.mxu0 %v1948_v52 }
 0xd50   :  { %v781_v11 = vpop.permute.xlu0 %780 }
 0xd52   :  { %1092 = vmatpush1.bf16.msra.mxu0 %v1946_v50 }
 0xd53   :  { %1093 = vmatprep.subr.bf16.mxu0 %v1954_v53 }
 0xd54   :  { %v481_v22 = vpop.permute.xlu0 %480 }
 0xd55   :  { %483 = vst.msk [vmem:[#allocation2 + $0x10] sm:$0xff] %vm286_vm4, %v481_v22 }
 0xd56   :  { %484 = vst.msk [vmem:[#allocation2 + $0x28] sm:$0xff] %vm288_vm5, %v481_v22  ;;  %1094 = vmatpush1.bf16.msra.mxu0 %v1952_v17 }
 0xd58   :  { %v631_v37 = vpop.permute.xlu0 %630 }
 0xe1c   :  { %v828_v28 = vpop.f32.mrb[28].mxu0 }
 0xe1d   :  { %v835_v14 = vadd.f32 %v828_v28, %v2242_v41  ;;  %v830_v18 = vpop.f32.mrb[29].mxu0  ;;  %v1931_v41 = vld [vmem:[%s2863_s1 + $0x60] ss:$8 sps:$4 sm:$0xff]   ;;  %v2545_v28 = vrot.slane %v1862_v15, %v2144_v23 }
 0xe1e   :  { %v836_v16 = vadd.f32 %v830_v18, %v2245_v59  ;;  %v832_v21 = vpop.f32.mrb[30].mxu0  ;;  %v1933_v59 = vld [vmem:[%s2863_s1 + $0x64] ss:$8 sps:$4 sm:$0xff]  }
 0xe1f   :  { %v837_v29 = vmul.f32 0.5, %v835_v14  ;;  %v833_v32 = vpop.f32.mrb[31].mxu0  ;;  %963 = vmatprep.subr.bf16.mxu1 %v1933_v59  ;;  %v2551_v21 = vrot.slane %v1862_v15, %v2149_v25 }
 0xe20   :  { %v838_v36 = vmul.f32 %v836_v16, %v2239_v26  ;;  %964 = vmatpush1.bf16.msra.mxu1 %v1931_v41 }
 0xe21   :  { %2009 = vtanh.f32 %v837_v29 }
 0xe22   :  { %2011 = vtanh.f32 %v838_v36 }
 0xe2b   :  { %v2010_v38 = vpop.eup %2009 }
 0xe2c   :  { %v2012_v40 = vpop.eup %2011  ;;  %v841_v42 = vmul.f32 0.5, %v2010_v38 }
 0xe2d   :  { %v842_v1 = vmul.f32 %v2012_v40, %v2239_v26 }
 0xe2e   :  { %v843_v45 = vadd.f32 0.5, %v841_v42 }
 0xe2f   :  { %v844_v46 = vadd.f32 %v842_v1, %v2249_v60 }
 0xe30   :  { %v845_v48 = vmul.f32 %v843_v45, %v776_v0 }
 0xe31   :  { %v846_v47 = vmul.f32 %v844_v46, %v843_v45 }
 0xe33   :  { %848 = vrot.lane.b32.xlu1 %v846_v47, %s2065_s16 }
 0xe37   :  { %405 = vrot.lane.b32.xlu1 %v2334_v55, %s2065_s16  ;;  %v1939_v55 = vld [vmem:[%s2863_s1 + $0x74] ss:$8 sps:$4 sm:$0xff]  }
 0xe38   :  { %965 = vmatprep.subr.bf16.mxu1 %v1939_v55 }
 0xe39   :  { %966 = vmatpush1.bf16.msra.mxu1 %v1937_v6 }
 0xe3a   :  { %967 = vmatprep.subr.bf16.mxu1 %v1945_v24 }
 0xe3d   :  { %968 = vmatpush1.bf16.msra.mxu1 %v1943_v20 }
 0xe3e   :  { %969 = vmatprep.subr.bf16.mxu1 %v1951_v35 }
 0xe41   :  { %970 = vmatpush1.bf16.msra.mxu1 %v1949_v13 }
 0xea5   :  { %v849_v9 = vpop.permute.xlu1 %848 }
 0xea6   :  { %v851_v49 = vadd.f32 %v849_v9, %v845_v48 }
 0xea8   :  { %2013 = vtanh.f32 %v851_v49 }
 0xea9   :  { %v406_v51 = vpop.permute.xlu1 %405 }
 0xeaa   :  { %408 = vst.msk [vmem:[#allocation2 + $0x8] sm:$0xff] %vm286_vm4, %v406_v51 }
 0xeab   :  { %409 = vst.msk [vmem:[#allocation2 + $0x30] sm:$0xff] %vm288_vm5, %v406_v51  ;;  %784 = vst.msk [vmem:[#allocation2 + $0x8] sm:$0xff] %vm288_vm5, %v781_v11 }
 0xeac   :  { %783 = vst.msk [vmem:[#allocation2 + $0x30] sm:$0xff] %vm286_vm4, %v781_v11 }
 0xeb2   :  { %v2014_v34 = vpop.eup %2013  ;;  %v889_v44 = vld [vmem:[#allocation2 + $0x8] sm:$0xff] }
 0xeb3   :  { %v853_v56 = vmul.f32 %v2014_v34, %v844_v46  ;;  %v894_v0 = vld [vmem:[#allocation2 + $0x30] sm:$0xff] }
 0xeb5   :  { %855 = vrot.lane.b32.xlu1 %v853_v56, %s2065_s16 }
 0xeb9   :  { %555 = vrot.lane.b32.xlu1 %v2376_v33, %s2065_s16 }
 0xebd   :  { %705 = vrot.lane.b32.xlu1 %v2416_v30, %s2065_s16 }
 0xf27   :  { %v856_v58 = vpop.permute.xlu1 %855 }
 0xf28   :  { %858 = vst.msk [vmem:[#allocation2 + $0x38] sm:$0xff] %vm286_vm4, %v856_v58 }
 0xf29   :  { %859 = vst.msk [vmem:[#allocation2] sm:$0xff] %vm288_vm5, %v856_v58 }
 0xf2b   :  { %v556_v39 = vpop.permute.xlu1 %555 }
 0xf2c   :  { %558 = vst.msk [vmem:[#allocation2 + $0x18] sm:$0xff] %vm286_vm4, %v556_v39 }
 0xf2d   :  { %559 = vst.msk [vmem:[#allocation2 + $0x20] sm:$0xff] %vm288_vm5, %v556_v39  ;;  %634 = vst.msk [vmem:[#allocation2 + $0x18] sm:$0xff] %vm288_vm5, %v631_v37 }
 0xf2e   :  { %633 = vst.msk [vmem:[#allocation2 + $0x20] sm:$0xff] %vm286_vm4, %v631_v37 }
 0xf2f   :  { %v706_v27 = vpop.permute.xlu1 %705  ;;  %v895_v57 = vld [vmem:[#allocation2 + $0x38] sm:$0xff] }
 0xf30   :  { %v888_v33 = vld [vmem:[#allocation2] sm:$0xff]  ;;  %708 = vst.msk [vmem:[#allocation2 + $0x28] sm:$0xff] %vm286_vm4, %v706_v27  ;;  %v899_v7 = vpack.c.bf16 %v895_v57, %v894_v0 }
 0xf31   :  { %709 = vst.msk [vmem:[#allocation2 + $0x10] sm:$0xff] %vm288_vm5, %v706_v27  ;;  %v896_v30 = vpack.c.bf16 %v889_v44, %v888_v33 }
 0xf33   :  { %1872 = vmatmul.mubr.msk.bf16.vlgmr.msra.gmra.mrb[28].mxu1 %vm336_vm3, %v896_v30  ;;  %1884 = vmatmul.mubr.msk.bf16.vlgmr.msra.gmra.mrb[32].mxu0 %vm336_vm3, %v896_v30 }
 0xf34   :  { %1005 = vmatprep.mubr.bf16.mxu1 %v2063_v2  ;;  %1129 = vmatprep.mubr.bf16.mxu0 %v2063_v2  ;;  %v891_v61 = vld [vmem:[#allocation2 + $0x18] sm:$0xff] }
 0xf35   :  { %v892_v31 = vld [vmem:[#allocation2 + $0x20] sm:$0xff] }
 0xf37   :  { %v893_v63 = vld [vmem:[#allocation2 + $0x28] sm:$0xff] }
 0xf38   :  { %v890_v43 = vld [vmem:[#allocation2 + $0x10] sm:$0xff]  ;;  %v898_v54 = vpack.c.bf16 %v893_v63, %v892_v31 }
 0xf39   :  { %v897_v62 = vpack.c.bf16 %v891_v61, %v890_v43 }
 0xf3b   :  { %1873 = vmatmul.mubr.msk.bf16.gmra.mrb[32].mxu1 %vm336_vm3, %v897_v62  ;;  %1885 = vmatmul.mubr.msk.bf16.gmra.mrb[36].mxu0 %vm336_vm3, %v897_v62 }
 0xf3c   :  { %1015 = vmatprep.mubr.bf16.mxu1 %v2063_v2  ;;  %1139 = vmatprep.mubr.bf16.mxu0 %v2063_v2 }
 0xf43   :  { %1874 = vmatmul.mubr.msk.bf16.gmra.mrb[36].mxu1 %vm336_vm3, %v898_v54  ;;  %1886 = vmatmul.mubr.msk.bf16.gmra.mrb[40].mxu0 %vm336_vm3, %v898_v54 }
 0xf44   :  { %1025 = vmatprep.mubr.bf16.mxu1 %v2063_v2  ;;  %1149 = vmatprep.mubr.bf16.mxu0 %v2063_v2 }
 0xf4b   :  { %1875 = vmatmul.mubr.msk.bf16.gmra.mrb[40].mxu1 %vm336_vm3, %v899_v7  ;;  %1887 = vmatmul.mubr.msk.bf16.gmra.mrb[44].mxu0 %vm336_vm3, %v899_v7 }
 0xf4c   :  { %1264 = vmatprep.mubr.bf16.mxu1 %v2063_v2  ;;  %1343 = vmatprep.mubr.bf16.mxu0 %v2063_v2 }
0x1006   :  { %v997_v11 = vpop.f32.mrb[28].mxu1  ;;  %v1121_v22 = vpop.f32.mrb[32].mxu0 }
0x1007   :  { %v2548_v14 = vadd.f32 %v1121_v22, %v2536_v12  ;;  %v999_v18 = vpop.f32.mrb[29].mxu1  ;;  %v1123_v16 = vpop.f32.mrb[33].mxu0 }
0x1008   :  { %v2554_v29 = vadd.f32 %v1123_v16, %v2542_v19  ;;  %v1001_v32 = vpop.f32.mrb[30].mxu1  ;;  %v1125_v36 = vpop.f32.mrb[34].mxu0 }
0x1009   :  { %v1002_v38 = vadd.f32 %v1001_v32, %v2545_v28  ;;  %v1126_v40 = vadd.f32 %v1125_v36, %v2536_v12  ;;  %v1003_v42 = vpop.f32.mrb[31].mxu1  ;;  %v1127_v23 = vpop.f32.mrb[35].mxu0  ;;  %v998_v36 = vadd.f32 %v997_v11, %v2545_v28 }
0x100a   :  { %v1004_v1 = vadd.f32 %v1003_v42, %v2551_v21  ;;  %v1128_v45 = vadd.f32 %v1127_v23, %v2542_v19  ;;  %v1000_v42 = vadd.f32 %v999_v18, %v2551_v21 }
0x100e   :  { %v1007_v46 = vpop.f32.mrb[32].mxu1  ;;  %v1131_v47 = vpop.f32.mrb[36].mxu0 }
0x100f   :  { %v1008_v25 = vadd.f32 %v1007_v46, %v2545_v28  ;;  %v1132_v41 = vadd.f32 %v1131_v47, %v2536_v12  ;;  %v1009_v59 = vpop.f32.mrb[33].mxu1  ;;  %v1133_v3 = vpop.f32.mrb[37].mxu0 }
0x1010   :  { %v1010_v4 = vadd.f32 %v1009_v59, %v2551_v21  ;;  %v1134_v55 = vadd.f32 %v1133_v3, %v2542_v19  ;;  %v1011_v5 = vpop.f32.mrb[34].mxu1  ;;  %v1135_v6 = vpop.f32.mrb[38].mxu0 }
0x1011   :  { %v1012_v8 = vadd.f32 %v1011_v5, %v2545_v28  ;;  %v1136_v48 = vadd.f32 %v1135_v6, %v2536_v12  ;;  %v1013_v9 = vpop.f32.mrb[35].mxu1  ;;  %v1137_v49 = vpop.f32.mrb[39].mxu0 }
0x1012   :  { %v1014_v20 = vadd.f32 %v1013_v9, %v2551_v21  ;;  %v1138_v24 = vadd.f32 %v1137_v49, %v2542_v19 }
0x1016   :  { %v1017_v50 = vpop.f32.mrb[36].mxu1  ;;  %v1141_v51 = vpop.f32.mrb[40].mxu0 }
0x1017   :  { %v1018_v52 = vadd.f32 %v1017_v50, %v2545_v28  ;;  %v1142_v35 = vadd.f32 %v1141_v51, %v2536_v12  ;;  %v1019_v53 = vpop.f32.mrb[37].mxu1  ;;  %v1143_v13 = vpop.f32.mrb[41].mxu0  ;;  %v2632_v50 = vld [vmem:[%s2863_s1 + $0xf4] ss:$8 sps:$4 sm:$0xff]   ;;  %v2640_v51 = vld [vmem:[%s2863_s1 + $0xf0] ss:$8 sps:$4 sm:$0xff]  }
0x1018   :  { %v1020_v17 = vadd.f32 %v1019_v53, %v2551_v21  ;;  %v1144_v34 = vadd.f32 %v1143_v13, %v2542_v19  ;;  %v1021_v56 = vpop.f32.mrb[38].mxu1  ;;  %v1145_v58 = vpop.f32.mrb[42].mxu0  ;;  %v2661_v13 = vld [vmem:[%s2863_s1 + $0x114] ss:$8 sps:$4 sm:$0xff]  }
0x1019   :  { %v1022_v39 = vadd.f32 %v1021_v56, %v2545_v28  ;;  %v1146_v37 = vadd.f32 %v1145_v58, %v2536_v12  ;;  %v1023_v27 = vpop.f32.mrb[39].mxu1  ;;  %v1147_v33 = vpop.f32.mrb[43].mxu0  ;;  %v2574_v44 = vadd.f32 %v1142_v35, %v1012_v8  ;;  %v2576_v30 = vadd.f32 %v1136_v48, %v1018_v52  ;;  %v2647_v52 = vld [vmem:[%s2863_s1 + $0x104] ss:$8 sps:$4 sm:$0xff]   ;;  %v2654_v35 = vld [vmem:[%s2863_s1 + $0x100] ss:$8 sps:$4 sm:$0xff]  }
0x101a   :  { %v1024_v43 = vadd.f32 %v1023_v27, %v2551_v21  ;;  %v1148_v61 = vadd.f32 %v1147_v33, %v2542_v19  ;;  %v2580_v62 = vadd.f32 %v1144_v34, %v1014_v20  ;;  %v2582_v63 = vadd.f32 %v1138_v24, %v1020_v17  ;;  %v2669_v17 = vld [vmem:[%s2863_s1 + $0x110] ss:$8 sps:$4 sm:$0xff]  }
0x101b   :  { %v2584_v31 = vadd.f32 %v1146_v37, %v1008_v25  ;;  %v2586_v54 = vadd.f32 %v1132_v41, %v1022_v39 }
0x101c   :  { %v2588_v57 = vadd.f32 %v1148_v61, %v1010_v4  ;;  %v2590_v0 = vadd.f32 %v1134_v55, %v1024_v43 }
0x101e   :  { %v1027_v7 = vpop.f32.mrb[40].mxu1  ;;  %v1151_v10 = vpop.f32.mrb[44].mxu0 }
0x101f   :  { %v1028_v15 = vadd.f32 %v1027_v7, %v2545_v28  ;;  %v1152_v22 = vadd.f32 %v1151_v10, %v2536_v12  ;;  %v1029_v16 = vpop.f32.mrb[41].mxu1  ;;  %v1153_v32 = vpop.f32.mrb[45].mxu0 }
0x1020   :  { %v1030_v23 = vadd.f32 %v1029_v16, %v2551_v21  ;;  %v1154_v46 = vadd.f32 %v1153_v32, %v2542_v19  ;;  %v1031_v47 = vpop.f32.mrb[42].mxu1  ;;  %v1155_v25 = vpop.f32.mrb[46].mxu0 }
0x1021   :  { %v1032_v41 = vadd.f32 %v1031_v47, %v2545_v28  ;;  %v1156_v59 = vadd.f32 %v1155_v25, %v2536_v12  ;;  %v1033_v3 = vpop.f32.mrb[43].mxu1  ;;  %v1157_v4 = vpop.f32.mrb[47].mxu0  ;;  %v2600_v55 = vadd.f32 %v1152_v22, %v1002_v38  ;;  %v2602_v5 = vadd.f32 %v1126_v40, %v1028_v15 }
0x1022   :  { %v1034_v11 = vadd.f32 %v1033_v3, %v2551_v21  ;;  %v1158_v18 = vadd.f32 %v1157_v4, %v2542_v19  ;;  %v2606_v6 = vadd.f32 %v1154_v46, %v1004_v1  ;;  %v2608_v8 = vadd.f32 %v1128_v45, %v1030_v23 }
0x1023   :  { %v1160_v48 = vadd.f32 %v1156_v59, %v998_v36  ;;  %v2611_v9 = vadd.f32 %v2548_v14, %v1032_v41  ;;  %v2622_v14 = vld [vmem:[%s2863_s1 + $0xe4] ss:$8 sps:$4 sm:$0xff]  }
0x1024   :  { %v1161_v28 = vadd.f32 %v1158_v18, %v1000_v42  ;;  %v2614_v12 = vadd.f32 %v2554_v29, %v1034_v11  ;;  %v2627_v29 = vld [vmem:[%s2863_s1 + $0xe0] ss:$8 sps:$4 sm:$0xff]   ;;  %1232 = vmatprep.subr.bf16.mxu1 %v2622_v14  ;;  %1311 = vmatprep.subr.bf16.mxu0 %v2622_v14 }
0x1025   :  { %v1162_v38 = vmul.f32 0.5, %v1160_v48  ;;  %1233 = vmatpush1.bf16.msra.mxu1 %v2627_v29  ;;  %1312 = vmatpush1.bf16.msra.mxu0 %v2627_v29 }
0x1026   :  { %v1163_v40 = vmul.f32 %v1161_v28, %v2239_v26  ;;  %1234 = vmatprep.subr.bf16.mxu1 %v2632_v50  ;;  %1313 = vmatprep.subr.bf16.mxu0 %v2632_v50 }
0x1027   :  { %2015 = vtanh.f32 %v1162_v38 }
0x1028   :  { %2017 = vtanh.f32 %v1163_v40 }
0x1029   :  { %1235 = vmatpush1.bf16.msra.mxu1 %v2640_v51  ;;  %1314 = vmatpush1.bf16.msra.mxu0 %v2640_v51 }
0x102a   :  { %1236 = vmatprep.subr.bf16.mxu1 %v2647_v52  ;;  %1315 = vmatprep.subr.bf16.mxu0 %v2647_v52 }
0x102d   :  { %1237 = vmatpush1.bf16.msra.mxu1 %v2654_v35  ;;  %1316 = vmatpush1.bf16.msra.mxu0 %v2654_v35 }
0x102e   :  { %1238 = vmatprep.subr.bf16.mxu1 %v2661_v13  ;;  %1317 = vmatprep.subr.bf16.mxu0 %v2661_v13 }
0x1031   :  { %v2016_v21 = vpop.eup %2015  ;;  %1239 = vmatpush1.bf16.msra.mxu1 %v2669_v17  ;;  %1318 = vmatpush1.bf16.msra.mxu0 %v2669_v17 }
0x1032   :  { %v2018_v49 = vpop.eup %2017  ;;  %v1166_v19 = vmul.f32 0.5, %v2016_v21  ;;  %1386 = vmatprep.subr.bf16.mxu1 %v2622_v14  ;;  %1461 = vmatprep.subr.bf16.mxu0 %v2622_v14 }
0x1033   :  { %v1167_v1 = vmul.f32 %v2018_v49, %v2239_v26 }
0x1034   :  { %v1168_v45 = vadd.f32 0.5, %v1166_v19 }
0x1035   :  { %v1169_v20 = vadd.f32 %v1167_v1, %v2249_v60 }
0x1037   :  { %v1170_v24 = vmul.f32 %v1169_v20, %v1168_v45 }
0x1039   :  { %2019 = vtanh.f32 %v1170_v24 }
0x1043   :  { %v2020_v53 = vpop.eup %2019 }
0x1044   :  { %1173 = vrot.lane.b32.xlu0 %v2020_v53, %s2065_s16 }
0x1048   :  { %1284 = vrot.lane.b32.xlu0 %v1170_v24, %s2065_s16 }
0x10b6   :  { %v1174_v34 = vpop.permute.xlu0 %1173 }
0x10b7   :  { %v2679_v56 = vmul.f32 %v1174_v34, %v1169_v20 }
0x10b9   :  { %v1185_v58 = vpack.c.bf16 %v2679_v56, %v2679_v56 }
0x10ba   :  { %v1285_v47 = vpop.permute.xlu0 %1284 }
0x10bb   :  { %1187 = vrot.lane.b32.xlu1 %v1185_v58, %s2065_s16 }
0x112d   :  { %v1188_v39 = vpop.permute.xlu1 %1187 }
0x112e   :  { %1896 = vmatmul.mubr.msk.bf16.vlgmr.msra.gmra.mrb[44].mxu1 %vm336_vm3, %v1188_v39 }
0x112f   :  { %1387 = vmatpush1.bf16.msra.mxu1 %v2627_v29  ;;  %1418 = vmatprep.mubr.bf16.mxu1 %v2063_v2 }
0x1130   :  { %1388 = vmatprep.subr.bf16.mxu1 %v2632_v50 }
0x1133   :  { %1389 = vmatpush1.bf16.msra.mxu1 %v2640_v51 }
0x1134   :  { %1390 = vmatprep.subr.bf16.mxu1 %v2647_v52 }
0x1137   :  { %1391 = vmatpush1.bf16.msra.mxu1 %v2654_v35 }
0x1138   :  { %1392 = vmatprep.subr.bf16.mxu1 %v2661_v13 }
0x113b   :  { %1393 = vmatpush1.bf16.msra.mxu1 %v2669_v17 }
0x113c   :  { %1536 = vmatprep.subr.bf16.mxu1 %v2622_v14 }
0x1201   :  { %v1266_v37 = vpop.f32.mrb[44].mxu1 }
0x1202   :  { %v1273_v27 = vadd.f32 %v1266_v37, %v2600_v55  ;;  %v1268_v33 = vpop.f32.mrb[45].mxu1 }
0x1203   :  { %v1274_v43 = vadd.f32 %v1268_v33, %v2606_v6  ;;  %v1270_v61 = vpop.f32.mrb[46].mxu1 }
0x1204   :  { %v1275_v7 = vmul.f32 0.5, %v1273_v27  ;;  %v1271_v10 = vpop.f32.mrb[47].mxu1 }
0x1205   :  { %v1276_v15 = vmul.f32 %v1274_v43, %v2239_v26 }
0x1206   :  { %2021 = vtanh.f32 %v1275_v7 }
0x1207   :  { %2023 = vtanh.f32 %v1276_v15 }
0x1210   :  { %v2022_v22 = vpop.eup %2021 }
0x1211   :  { %v2024_v16 = vpop.eup %2023  ;;  %v1279_v32 = vmul.f32 0.5, %v2022_v22 }
0x1212   :  { %v1280_v36 = vmul.f32 %v2024_v16, %v2239_v26 }
0x1213   :  { %v1281_v42 = vadd.f32 0.5, %v1279_v32 }
0x1214   :  { %v1282_v23 = vadd.f32 %v1280_v36, %v2249_v60 }
0x1215   :  { %v1287_v25 = vmul.f32 %v1285_v47, %v1281_v42 }
0x1216   :  { %v1288_v46 = vmul.f32 %v1282_v23, %v1281_v42 }
0x1218   :  { %1290 = vrot.lane.b32.xlu1 %v1288_v46, %s2065_s16 }
0x128a   :  { %v1291_v41 = vpop.permute.xlu1 %1290 }
0x128b   :  { %v1293_v59 = vadd.f32 %v1291_v41, %v1287_v25 }
0x128d   :  { %2025 = vtanh.f32 %v1293_v59 }
0x1297   :  { %v2026_v3 = vpop.eup %2025 }
0x1298   :  { %v2700_v4 = vmul.f32 %v2026_v3, %v1282_v23 }
0x129a   :  { %v1304_v55 = vpack.c.bf16 %v2700_v4, %v2700_v4 }
0x129c   :  { %1306 = vrot.lane.b32.xlu0 %v1304_v55, %s2065_s16 }
0x130e   :  { %v1307_v11 = vpop.permute.xlu0 %1306 }
0x130f   :  { %1897 = vmatmul.mubr.msk.bf16.vlgmr.msra.gmra.mrb[48].mxu0 %vm336_vm3, %v1307_v11 }
0x1310   :  { %1462 = vmatpush1.bf16.msra.mxu0 %v2627_v29  ;;  %1493 = vmatprep.mubr.bf16.mxu0 %v2063_v2 }
0x1311   :  { %1463 = vmatprep.subr.bf16.mxu0 %v2632_v50 }
0x1314   :  { %1464 = vmatpush1.bf16.msra.mxu0 %v2640_v51 }
0x1315   :  { %1465 = vmatprep.subr.bf16.mxu0 %v2647_v52 }
0x1318   :  { %1466 = vmatpush1.bf16.msra.mxu0 %v2654_v35 }
0x1319   :  { %1467 = vmatprep.subr.bf16.mxu0 %v2661_v13 }
0x131c   :  { %1468 = vmatpush1.bf16.msra.mxu0 %v2669_v17 }
0x131d   :  { %1611 = vmatprep.subr.bf16.mxu0 %v2622_v14 }
0x13e2   :  { %v1345_v18 = vpop.f32.mrb[48].mxu0 }
0x13e3   :  { %v1352_v6 = vadd.f32 %v1345_v18, %v2584_v31  ;;  %v1347_v48 = vpop.f32.mrb[49].mxu0 }
0x13e4   :  { %v1353_v28 = vadd.f32 %v1347_v48, %v2588_v57  ;;  %v1349_v38 = vpop.f32.mrb[50].mxu0 }
0x13e5   :  { %v1354_v40 = vmul.f32 0.5, %v1352_v6  ;;  %v1350_v21 = vpop.f32.mrb[51].mxu0 }
0x13e6   :  { %v1355_v49 = vmul.f32 %v1353_v28, %v2239_v26 }
0x13e7   :  { %2027 = vtanh.f32 %v1354_v40 }
0x13e8   :  { %2029 = vtanh.f32 %v1355_v49 }
0x13f1   :  { %v2028_v19 = vpop.eup %2027 }
0x13f2   :  { %v2030_v1 = vpop.eup %2029  ;;  %v1358_v45 = vmul.f32 0.5, %v2028_v19 }
0x13f3   :  { %v1359_v20 = vmul.f32 %v2030_v1, %v2239_v26 }
0x13f4   :  { %v1360_v24 = vadd.f32 0.5, %v1358_v45 }
0x13f5   :  { %v1361_v53 = vadd.f32 %v1359_v20, %v2249_v60 }
0x13f6   :  { %v1362_v31 = vmul.f32 %v1360_v24, %v1293_v59 }
0x13f7   :  { %v1363_v34 = vmul.f32 %v1361_v53, %v1360_v24 }
0x13f9   :  { %1365 = vrot.lane.b32.xlu1 %v1363_v34, %s2065_s16 }
0x146b   :  { %v1366_v57 = vpop.permute.xlu1 %1365 }
0x146c   :  { %v1368_v58 = vadd.f32 %v1366_v57, %v1362_v31 }
0x146e   :  { %2031 = vtanh.f32 %v1368_v58 }
0x1478   :  { %v2032_v39 = vpop.eup %2031 }
0x1479   :  { %v2721_v37 = vmul.f32 %v2032_v39, %v1361_v53 }
0x147b   :  { %v1379_v27 = vpack.c.bf16 %v2721_v37, %v2721_v37 }
0x147d   :  { %1381 = vrot.lane.b32.xlu0 %v1379_v27, %s2065_s16 }
0x14ef   :  { %v1382_v33 = vpop.permute.xlu0 %1381 }
0x14f0   :  { %1898 = vmatmul.mubr.msk.bf16.vlgmr.msra.gmra.mrb[48].mxu1 %vm336_vm3, %v1382_v33 }
0x14f1   :  { %1537 = vmatpush1.bf16.msra.mxu1 %v2627_v29  ;;  %1568 = vmatprep.mubr.bf16.mxu1 %v2063_v2 }
0x14f2   :  { %1538 = vmatprep.subr.bf16.mxu1 %v2632_v50 }
0x14f5   :  { %1539 = vmatpush1.bf16.msra.mxu1 %v2640_v51 }
0x14f6   :  { %1540 = vmatprep.subr.bf16.mxu1 %v2647_v52 }
0x14f9   :  { %1541 = vmatpush1.bf16.msra.mxu1 %v2654_v35 }
0x14fa   :  { %1542 = vmatprep.subr.bf16.mxu1 %v2661_v13 }
0x14fd   :  { %1543 = vmatpush1.bf16.msra.mxu1 %v2669_v17 }
0x14fe   :  { %1686 = vmatprep.subr.bf16.mxu1 %v2622_v14 }
0x15c3   :  { %v1420_v43 = vpop.f32.mrb[48].mxu1 }
0x15c4   :  { %v1427_v61 = vadd.f32 %v1420_v43, %v2574_v44  ;;  %v1422_v7 = vpop.f32.mrb[49].mxu1 }
0x15c5   :  { %v1428_v10 = vadd.f32 %v1422_v7, %v2580_v62  ;;  %v1424_v15 = vpop.f32.mrb[50].mxu1 }
0x15c6   :  { %v1429_v22 = vmul.f32 0.5, %v1427_v61  ;;  %v1425_v16 = vpop.f32.mrb[51].mxu1 }
0x15c7   :  { %v1430_v32 = vmul.f32 %v1428_v10, %v2239_v26 }
0x15c8   :  { %2033 = vtanh.f32 %v1429_v22 }
0x15c9   :  { %2035 = vtanh.f32 %v1430_v32 }
0x15d2   :  { %v2034_v36 = vpop.eup %2033 }
0x15d3   :  { %v2036_v42 = vpop.eup %2035  ;;  %v1433_v23 = vmul.f32 0.5, %v2034_v36 }
0x15d4   :  { %v1434_v46 = vmul.f32 %v2036_v42, %v2239_v26 }
0x15d5   :  { %v1435_v47 = vadd.f32 0.5, %v1433_v23 }
0x15d6   :  { %v1436_v14 = vadd.f32 %v1434_v46, %v2249_v60 }
0x15d7   :  { %v1437_v44 = vmul.f32 %v1435_v47, %v1368_v58 }
0x15d8   :  { %v1438_v25 = vmul.f32 %v1436_v14, %v1435_v47 }
0x15da   :  { %1440 = vrot.lane.b32.xlu1 %v1438_v25, %s2065_s16 }
0x164c   :  { %v1441_v62 = vpop.permute.xlu1 %1440 }
0x164d   :  { %v1443_v41 = vadd.f32 %v1441_v62, %v1437_v44 }
0x164f   :  { %2037 = vtanh.f32 %v1443_v41 }
0x1659   :  { %v2038_v59 = vpop.eup %2037 }
0x165a   :  { %v2742_v3 = vmul.f32 %v2038_v59, %v1436_v14 }
0x165c   :  { %v1454_v55 = vpack.c.bf16 %v2742_v3, %v2742_v3 }
0x165e   :  { %1456 = vrot.lane.b32.xlu0 %v1454_v55, %s2065_s16 }
0x16d0   :  { %v1457_v11 = vpop.permute.xlu0 %1456 }
0x16d1   :  { %1899 = vmatmul.mubr.msk.bf16.vlgmr.msra.gmra.mrb[52].mxu0 %vm336_vm3, %v1457_v11 }
0x16d2   :  { %1612 = vmatpush1.bf16.msra.mxu0 %v2627_v29  ;;  %1643 = vmatprep.mubr.bf16.mxu0 %v2063_v2 }
0x16d3   :  { %1613 = vmatprep.subr.bf16.mxu0 %v2632_v50 }
0x16d6   :  { %1614 = vmatpush1.bf16.msra.mxu0 %v2640_v51 }
0x16d7   :  { %1615 = vmatprep.subr.bf16.mxu0 %v2647_v52 }
0x16da   :  { %1616 = vmatpush1.bf16.msra.mxu0 %v2654_v35 }
0x16db   :  { %1617 = vmatprep.subr.bf16.mxu0 %v2661_v13 }
0x16de   :  { %1618 = vmatpush1.bf16.msra.mxu0 %v2669_v17 }
0x17a4   :  { %v1495_v18 = vpop.f32.mrb[52].mxu0 }
0x17a5   :  { %v1502_v6 = vadd.f32 %v1495_v18, %v2576_v30  ;;  %v1497_v48 = vpop.f32.mrb[53].mxu0 }
0x17a6   :  { %v1503_v28 = vadd.f32 %v1497_v48, %v2582_v63  ;;  %v1499_v38 = vpop.f32.mrb[54].mxu0 }
0x17a7   :  { %v1504_v40 = vmul.f32 0.5, %v1502_v6  ;;  %v1500_v21 = vpop.f32.mrb[55].mxu0 }
0x17a8   :  { %v1505_v49 = vmul.f32 %v1503_v28, %v2239_v26 }
0x17a9   :  { %2039 = vtanh.f32 %v1504_v40 }
0x17aa   :  { %2041 = vtanh.f32 %v1505_v49 }
0x17b3   :  { %v2040_v19 = vpop.eup %2039 }
0x17b4   :  { %v2042_v1 = vpop.eup %2041  ;;  %v1508_v45 = vmul.f32 0.5, %v2040_v19 }
0x17b5   :  { %v1509_v20 = vmul.f32 %v2042_v1, %v2239_v26 }
0x17b6   :  { %v1510_v24 = vadd.f32 0.5, %v1508_v45 }
0x17b7   :  { %v1511_v53 = vadd.f32 %v1509_v20, %v2249_v60 }
0x17b8   :  { %v1512_v30 = vmul.f32 %v1510_v24, %v1443_v41 }
0x17b9   :  { %v1513_v34 = vmul.f32 %v1511_v53, %v1510_v24 }
0x17bb   :  { %1515 = vrot.lane.b32.xlu1 %v1513_v34, %s2065_s16 }
0x182d   :  { %v1516_v63 = vpop.permute.xlu1 %1515 }
0x182e   :  { %v1518_v31 = vadd.f32 %v1516_v63, %v1512_v30 }
0x1830   :  { %2043 = vtanh.f32 %v1518_v31 }
0x183a   :  { %v2044_v57 = vpop.eup %2043 }
0x183b   :  { %v2762_v58 = vmul.f32 %v2044_v57, %v1511_v53 }
0x183d   :  { %v1529_v39 = vpack.c.bf16 %v2762_v58, %v2762_v58 }
0x183f   :  { %1531 = vrot.lane.b32.xlu0 %v1529_v39, %s2065_s16 }
0x18b1   :  { %v1532_v27 = vpop.permute.xlu0 %1531 }
0x18b2   :  { %1900 = vmatmul.mubr.msk.bf16.vlgmr.msra.gmra.mrb[52].mxu1 %vm336_vm3, %v1532_v27 }
0x18b3   :  { %1687 = vmatpush1.bf16.msra.mxu1 %v2627_v29  ;;  %1718 = vmatprep.mubr.bf16.mxu1 %v2063_v2 }
0x18b4   :  { %1688 = vmatprep.subr.bf16.mxu1 %v2632_v50 }
0x18b7   :  { %1689 = vmatpush1.bf16.msra.mxu1 %v2640_v51 }
0x18b8   :  { %1690 = vmatprep.subr.bf16.mxu1 %v2647_v52 }
0x18bb   :  { %1691 = vmatpush1.bf16.msra.mxu1 %v2654_v35 }
0x18bc   :  { %1692 = vmatprep.subr.bf16.mxu1 %v2661_v13 }
0x18bf   :  { %1693 = vmatpush1.bf16.msra.mxu1 %v2669_v17 }
0x1985   :  { %v1570_v33 = vpop.f32.mrb[52].mxu1 }
0x1986   :  { %v1577_v43 = vadd.f32 %v1570_v33, %v2586_v54  ;;  %v1572_v61 = vpop.f32.mrb[53].mxu1 }
0x1987   :  { %v1578_v29 = vadd.f32 %v1572_v61, %v2590_v0  ;;  %v1574_v7 = vpop.f32.mrb[54].mxu1 }
0x1988   :  { %v1579_v2 = vmul.f32 0.5, %v1577_v43  ;;  %v1575_v10 = vpop.f32.mrb[55].mxu1 }
0x1989   :  { %v1580_v50 = vmul.f32 %v1578_v29, %v2239_v26 }
0x198a   :  { %2045 = vtanh.f32 %v1579_v2 }
0x198b   :  { %2047 = vtanh.f32 %v1580_v50  ;;  %v10_v50 = vstv %s2866_s4 }
0x198c   :  { %11 = vst [vmem:[#allocation3] sm:$0x1] %v10_v50 }
0x1994   :  { %v2046_v51 = vpop.eup %2045 }
0x1995   :  { %v2048_v52 = vpop.eup %2047  ;;  %v1583_v35 = vmul.f32 0.5, %v2046_v51 }
0x1996   :  { %v1584_v13 = vmul.f32 %v2048_v52, %v2239_v26 }
0x1997   :  { %v1585_v15 = vadd.f32 0.5, %v1583_v35  ;;  %v1903_v35 = vld [vmem:[%s2867_s3] ss:$0 sm:$0xff] }
0x1998   :  { %v1586_v17 = vadd.f32 %v1584_v13, %v2249_v60  ;;  %v1904_v13 = vld [vmem:[%s2867_s3 + $0x1] ss:$0 sm:$0xff] }
0x1999   :  { %v1587_v54 = vmul.f32 %v1585_v15, %v1518_v31 }
0x199a   :  { %v1588_v22 = vmul.f32 %v1586_v17, %v1585_v15 }
0x199c   :  { %1590 = vrot.lane.b32.xlu1 %v1588_v22, %s2065_s16  ;;  %v1905_v22 = vld [vmem:[%s2867_s3 + $0x2] ss:$0 sm:$0xff] }
0x1a0e   :  { %v1591_v0 = vpop.permute.xlu1 %1590 }
0x1a0f   :  { %v1593_v16 = vadd.f32 %v1591_v0, %v1587_v54 }
0x1a11   :  { %2049 = vtanh.f32 %v1593_v16 }
0x1a1b   :  { %v2050_v32 = vpop.eup %2049 }
0x1a1c   :  { %v2782_v36 = vmul.f32 %v2050_v32, %v1586_v17 }
0x1a1e   :  { %v1604_v42 = vpack.c.bf16 %v2782_v36, %v2782_v36 }
0x1a20   :  { %1606 = vrot.lane.b32.xlu0 %v1604_v42, %s2065_s16 }
0x1a92   :  { %v1607_v23 = vpop.permute.xlu0 %1606 }
0x1a93   :  { %1901 = vmatmul.mubr.msk.bf16.vlgmr.msra.gmra.mrb[56].mxu0 %vm336_vm3, %v1607_v23 }
0x1b66   :  { %v1645_v46 = vpop.f32.mrb[56].mxu0 }
0x1b67   :  { %v1652_v47 = vadd.f32 %v1645_v46, %v2602_v5  ;;  %v1647_v14 = vpop.f32.mrb[57].mxu0  ;;  %v1907_v46 = vld [vmem:[%s2867_s3 + $0x4] ss:$0 sm:$0xff] }
0x1b68   :  { %v1653_v25 = vadd.f32 %v1647_v14, %v2608_v8  ;;  %v1649_v44 = vpop.f32.mrb[58].mxu0 }
0x1b69   :  { %v1654_v62 = vmul.f32 0.5, %v1652_v47  ;;  %v1650_v41 = vpop.f32.mrb[59].mxu0  ;;  %v1908_v44 = vld [vmem:[%s2867_s3 + $0x5] ss:$0 sm:$0xff] }
0x1b6a   :  { %v1655_v59 = vmul.f32 %v1653_v25, %v2239_v26 }
0x1b6b   :  { %2051 = vtanh.f32 %v1654_v62 }
0x1b6c   :  { %2053 = vtanh.f32 %v1655_v59 }
0x1b75   :  { %v2052_v55 = vpop.eup %2051 }
0x1b76   :  { %v2054_v11 = vpop.eup %2053  ;;  %v1658_v18 = vmul.f32 0.5, %v2052_v55  ;;  %v1909_v55 = vld [vmem:[%s2867_s3 + $0x6] ss:$0 sm:$0xff] }
0x1b77   :  { %v1659_v6 = vmul.f32 %v2054_v11, %v2239_v26 }
0x1b78   :  { %v1660_v48 = vadd.f32 0.5, %v1658_v18 }
0x1b79   :  { %v1661_v28 = vadd.f32 %v1659_v6, %v2249_v60 }
0x1b7a   :  { %v1662_v5 = vmul.f32 %v1660_v48, %v1593_v16  ;;  %v1906_v16 = vld [vmem:[%s2867_s3 + $0x3] ss:$0 sm:$0xff] }
0x1b7b   :  { %v1663_v38 = vmul.f32 %v1661_v28, %v1660_v48  ;;  %v1910_v48 = vld [vmem:[%s2867_s3 + $0x7] ss:$0 sm:$0xff] }
0x1b7d   :  { %1665 = vrot.lane.b32.xlu1 %v1663_v38, %s2065_s16 }
0x1bef   :  { %v1666_v8 = vpop.permute.xlu1 %1665 }
0x1bf0   :  { %v1668_v40 = vadd.f32 %v1666_v8, %v1662_v5 }
0x1bf2   :  { %2055 = vtanh.f32 %v1668_v40 }
0x1bfc   :  { %v2056_v21 = vpop.eup %2055 }
0x1bfd   :  { %v1670_v49 = vmul.f32 %v2056_v21, %v1661_v28 }
0x1bff   :  { %v1679_v19 = vpack.c.bf16 %v1670_v49, %v1670_v49 }
0x1c01   :  { %1681 = vrot.lane.b32.xlu0 %v1679_v19, %s2065_s16 }
0x1c05   :  { %1178 = vrot.lane.b32.xlu0 %v2679_v56, %s2065_s16 }
0x1c09   :  { %1672 = vrot.lane.b32.xlu0 %v1670_v49, %s2065_s16  ;;  %v1911_v49 = vld [vmem:[#allocation3] ss:$0 sm:$0xff] }
0x1c0d   :  { %1372 = vrot.lane.b32.xlu0 %v2721_v37, %s2065_s16 }
0x1c11   :  { %1447 = vrot.lane.b32.xlu0 %v2742_v3, %s2065_s16 }
0x1c73   :  { %v1682_v1 = vpop.permute.xlu0 %1681 }
0x1c74   :  { %1902 = vmatmul.mubr.msk.bf16.vlgmr.msra.gmra.mrb[56].mxu1 %vm336_vm3, %v1682_v1 }
0x1c77   :  { %v1179_v45 = vpop.permute.xlu0 %1178 }
0x1c78   :  { %1181 = vst.msk [vmem:[#allocation2] sm:$0xff] %vm286_vm4, %v1179_v45 }
0x1c79   :  { %1182 = vst.msk [vmem:[#allocation2 + $0x38] sm:$0xff] %vm288_vm5, %v1179_v45 }
0x1c7b   :  { %v1673_v20 = vpop.permute.xlu0 %1672 }
0x1c7f   :  { %v1373_v24 = vpop.permute.xlu0 %1372 }
0x1c80   :  { %1375 = vst.msk [vmem:[#allocation2 + $0x10] sm:$0xff] %vm286_vm4, %v1373_v24 }
0x1c81   :  { %1376 = vst.msk [vmem:[#allocation2 + $0x28] sm:$0xff] %vm288_vm5, %v1373_v24 }
0x1c83   :  { %v1448_v56 = vpop.permute.xlu0 %1447 }
0x1c84   :  { %1450 = vst.msk [vmem:[#allocation2 + $0x18] sm:$0xff] %vm286_vm4, %v1448_v56 }
0x1c85   :  { %1451 = vst.msk [vmem:[#allocation2 + $0x20] sm:$0xff] %vm288_vm5, %v1448_v56 }
0x1d47   :  { %v1720_v37 = vpop.f32.mrb[56].mxu1 }
0x1d48   :  { %v1727_v3 = vadd.f32 %v1720_v37, %v2611_v9  ;;  %v1722_v53 = vpop.f32.mrb[57].mxu1 }
0x1d49   :  { %v1728_v34 = vadd.f32 %v1722_v53, %v2614_v12  ;;  %v1724_v30 = vpop.f32.mrb[58].mxu1 }
0x1d4a   :  { %v1729_v63 = vmul.f32 0.5, %v1727_v3  ;;  %v1725_v31 = vpop.f32.mrb[59].mxu1 }
0x1d4b   :  { %v1730_v57 = vmul.f32 %v1728_v34, %v2239_v26 }
0x1d4c   :  { %2057 = vtanh.f32 %v1729_v63 }
0x1d4d   :  { %2059 = vtanh.f32 %v1730_v57 }
0x1d56   :  { %v2058_v39 = vpop.eup %2057 }
0x1d57   :  { %v2060_v27 = vpop.eup %2059  ;;  %v1733_v33 = vmul.f32 0.5, %v2058_v39 }
0x1d58   :  { %v1734_v43 = vmul.f32 %v2060_v27, %v2239_v26 }
0x1d59   :  { %v1735_v61 = vadd.f32 0.5, %v1733_v33 }
0x1d5a   :  { %v1736_v29 = vadd.f32 %v1734_v43, %v2249_v60 }
0x1d5b   :  { %v1737_v9 = vmul.f32 %v1735_v61, %v1668_v40 }
0x1d5c   :  { %v1738_v7 = vmul.f32 %v1736_v29, %v1735_v61 }
0x1d5e   :  { %1740 = vrot.lane.b32.xlu1 %v1738_v7, %s2065_s16 }
0x1d62   :  { %1297 = vrot.lane.b32.xlu1 %v2700_v4, %s2065_s16 }
0x1d66   :  { %1597 = vrot.lane.b32.xlu1 %v2782_v36, %s2065_s16 }
0x1dd0   :  { %v1741_v12 = vpop.permute.xlu1 %1740 }
0x1dd1   :  { %v1743_v2 = vadd.f32 %v1741_v12, %v1737_v9 }
0x1dd3   :  { %2061 = vtanh.f32 %v1743_v2 }
0x1dd4   :  { %v1298_v10 = vpop.permute.xlu1 %1297 }
0x1dd5   :  { %1300 = vst.msk [vmem:[#allocation2 + $0x8] sm:$0xff] %vm286_vm4, %v1298_v10 }
0x1dd6   :  { %1301 = vst.msk [vmem:[#allocation2 + $0x30] sm:$0xff] %vm288_vm5, %v1298_v10  ;;  %1676 = vst.msk [vmem:[#allocation2 + $0x8] sm:$0xff] %vm288_vm5, %v1673_v20 }
0x1dd7   :  { %1675 = vst.msk [vmem:[#allocation2 + $0x30] sm:$0xff] %vm286_vm4, %v1673_v20 }
0x1dd8   :  { %v1598_v26 = vpop.permute.xlu1 %1597 }
0x1dd9   :  { %1600 = vst.msk [vmem:[#allocation2 + $0x28] sm:$0xff] %vm286_vm4, %v1598_v26 }
0x1dda   :  { %1601 = vst.msk [vmem:[#allocation2 + $0x10] sm:$0xff] %vm288_vm5, %v1598_v26 }
0x1ddd   :  { %v2062_v60 = vpop.eup %2061 }
0x1dde   :  { %v1745_v4 = vmul.f32 %v2062_v60, %v1736_v29  ;;  %v1799_v59 = vld [vmem:[#allocation2 + $0x30] sm:$0xff] }
0x1ddf   :  { %v1805_v38 = vmul.f32 %v1909_v55, %v1799_v59 }
0x1de0   :  { %1747 = vrot.lane.b32.xlu1 %v1745_v4, %s2065_s16  ;;  %v1791_v25 = vld [vmem:[#allocation2 + $0x28] sm:$0xff] }
0x1de1   :  { %v1767_v17 = vld [vmem:[#allocation2 + $0x10] sm:$0xff]  ;;  %v1797_v18 = vmul.f32 %v1908_v44, %v1791_v25 }
0x1de2   :  { %v1773_v36 = vmul.f32 %v1905_v22, %v1767_v17 }
0x1de4   :  { %1522 = vrot.lane.b32.xlu1 %v2762_v58, %s2065_s16  ;;  %v1759_v58 = vld [vmem:[#allocation2 + $0x8] sm:$0xff] }
0x1de5   :  { %v1765_v0 = vmul.f32 %v1904_v13, %v1759_v58 }
0x1e52   :  { %v1748_v51 = vpop.permute.xlu1 %1747 }
0x1e53   :  { %1750 = vst.msk [vmem:[#allocation2 + $0x38] sm:$0xff] %vm286_vm4, %v1748_v51 }
0x1e54   :  { %1751 = vst.msk [vmem:[#allocation2] sm:$0xff] %vm288_vm5, %v1748_v51 }
0x1e56   :  { %v1523_v52 = vpop.permute.xlu1 %1522 }
0x1e57   :  { %1525 = vst.msk [vmem:[#allocation2 + $0x20] sm:$0xff] %vm286_vm4, %v1523_v52 }
0x1e58   :  { %1526 = vst.msk [vmem:[#allocation2 + $0x18] sm:$0xff] %vm288_vm5, %v1523_v52 }
0x1e5a   :  { %v1807_v6 = vld [vmem:[#allocation2 + $0x38] sm:$0xff] }
0x1e5b   :  { %v1752_v15 = vld [vmem:[#allocation2] sm:$0xff]  ;;  %v1813_v8 = vmul.f32 %v1910_v48, %v1807_v6 }
0x1e5c   :  { %v1758_v54 = vmul.f32 %v1903_v35, %v1752_v15 }
0x1e5e   :  { %v1766_v32 = vadd.f32 %v1765_v0, %v1758_v54  ;;  %v1783_v23 = vld [vmem:[#allocation2 + $0x20] sm:$0xff] }
0x1e5f   :  { %v1775_v42 = vld [vmem:[#allocation2 + $0x18] sm:$0xff]  ;;  %v1789_v41 = vmul.f32 %v1907_v46, %v1783_v23 }
0x1e60   :  { %v1774_v47 = vadd.f32 %v1773_v36, %v1766_v32  ;;  %v1781_v14 = vmul.f32 %v1906_v16, %v1775_v42 }
0x1e62   :  { %v1782_v62 = vadd.f32 %v1781_v14, %v1774_v47 }
0x1e64   :  { %v1790_v11 = vadd.f32 %v1789_v41, %v1782_v62 }
0x1e66   :  { %v1798_v28 = vadd.f32 %v1797_v18, %v1790_v11 }
0x1e68   :  { %v1806_v5 = vadd.f32 %v1805_v38, %v1798_v28 }
0x1e6a   :  { %v1814_v40 = vadd.f32 %v1813_v8, %v1806_v5 }
0x1e6c   :  { %v1815_v21 = vsel %vm336_vm3, %v1814_v40, 0.0 }
0x1e6d   :  { %1816 = vadd.xlane.f32.xlu0 %v1815_v21 }
0x1efa   :  { %v1817_v19 = vpop.xlane.xlu0 %1816 }
0x1efb   :  { %v1825_v1 = vadd.f32 %v1911_v49, %v1817_v19 }
0x1efd   :  { %1827 = vst.msk [vmem:[%s2868_s5] sm:$0xff] %vm1826_vm6, %v1825_v1 }

</bundles_post_ra>
